<compile_context>
chip_gen: v5e
topology: v5e:2x2
jax: 0.10.0
libtpu: 0.0.40
codegen_flags: <defaults>
</compile_context>

<pallas_src>
import math
import functools

import jax
import jax.numpy as jnp
from jax.experimental import pallas as pl
from jax.experimental.pallas import tpu as pltpu


def _layernorm(x, w, b, eps=1e-5):
    # One pass: sum(x) and sum(x*x) reduced together, math in f32 on the VPU.
    # (E[x^2]-E[x]^2 is fine for typical ViT activation ranges.)
    d = x.shape[-1]
    s1 = jnp.sum(x, axis=-1, keepdims=True)
    s2 = jnp.sum(x * x, axis=-1, keepdims=True)
    mu = s1 / d
    var = s2 / d - mu * mu
    return (x - mu) * jax.lax.rsqrt(var + eps) * w + b


def vit_layer_kernel(
    x_ref,                      # [1, S_pad, D] f32  full (padded) sequence of this batch elem
    ln1w_ref, ln1b_ref,         # [1, D] f32
    wq_ref, bq_ref,             # [D, D] bf16 (head-permuted, 1/sqrt(hs) folded), [1, D] f32
    wkv_ref, bkv_ref,           # [D, 2D] bf16 (k || v, head-permuted), [1, 2D] f32
    ln2w_ref, ln2b_ref,         # [1, D] f32
    w1_ref, b1_ref,             # [D, I] bf16, [1, I] f32
    w2_ref, b2_ref,             # [I, D] bf16, [1, D] f32
    out_ref,                    # [1, Tq, D]
    k_scratch, v_scratch,       # [S_pad, H, hs] bf16, persistent across query tiles
    *, num_heads, valid_len,
):
    f32 = jnp.float32
    bf16 = jnp.bfloat16

    i = pl.program_id(1)
    S = x_ref.shape[1]
    D = x_ref.shape[2]
    Tq = out_ref.shape[1]
    H = num_heads
    hs = D // H

    ln1w = ln1w_ref[...]
    ln1b = ln1b_ref[...]

    # --- K/V are shared by every query tile of this batch element: compute once. ---
    @pl.when(i == 0)
    def _():
        xn_full = _layernorm(x_ref[0], ln1w, ln1b).astype(bf16)
        kv = jnp.dot(xn_full, wkv_ref[...], preferred_element_type=f32) + bkv_ref[...]
        k_scratch[...] = kv[:, :D].reshape(S, H, hs).astype(bf16)
        v_scratch[...] = kv[:, D:].reshape(S, H, hs).astype(bf16)

    # --- query tile: sliced straight out of the VMEM-resident full sequence ---
    row0 = pl.multiple_of(i * Tq, Tq)
    x_tile = x_ref[0, pl.ds(row0, Tq), :]                        # [Tq, D] f32
    xn_tile = _layernorm(x_tile, ln1w, ln1b).astype(bf16)
    q = jnp.dot(xn_tile, wq_ref[...], preferred_element_type=f32) + bq_ref[...]
    q3 = q.reshape(Tq, H, hs).astype(bf16)                       # head-major columns

    k3 = k_scratch[...]
    v3 = v_scratch[...]

    # --- attention, batched over heads (single dot_general per contraction) ---
    scores = jnp.einsum("qhd,khd->hqk", q3, k3, preferred_element_type=f32)   # [H, Tq, S]
    if valid_len < S:
        # mask padded key columns before softmax
        col = jax.lax.broadcasted_iota(jnp.int32, scores.shape, 2)
        scores = jnp.where(col < valid_len, scores, jnp.float32(-1e30))
    scores = scores - jnp.max(scores, axis=-1, keepdims=True)
    e = jnp.exp(scores)
    denom = jnp.sum(e, axis=-1, keepdims=True)
    p = e * pl.reciprocal(denom, approx=True)                    # softmax (EUP recip)
    ctx = jnp.einsum("hqk,khd->qhd", p.astype(bf16), v3,
                     preferred_element_type=f32)                 # [Tq, H, hs]
    attn = ctx.reshape(Tq, D)

    # --- first residual ---
    y = x_tile + attn

    # --- norm_after + MLP (SiLU) ---
    yn = _layernorm(y, ln2w_ref[...], ln2b_ref[...]).astype(bf16)
    h1 = jnp.dot(yn, w1_ref[...], preferred_element_type=f32) + b1_ref[...]
    h1 = h1 * jax.nn.sigmoid(h1)                                 # SiLU in f32
    mlp = jnp.dot(h1.astype(bf16), w2_ref[...], preferred_element_type=f32) + b2_ref[...]

    # --- second residual ---
    out_ref[0] = (y + mlp).astype(out_ref.dtype)


# ----------------------------- feature detection helpers -----------------------------

_SINGLE_BUFFER_OK = None


def _probe_kernel(w_ref, x_ref, o_ref):
    o_ref[...] = w_ref[...] + x_ref[...]


def _single_buffer_supported():
    """Feature-detect pl.Buffered(1) (single-buffered grid-constant operands) once."""
    global _SINGLE_BUFFER_OK
    if _SINGLE_BUFFER_OK is None:
        try:
            out = pl.pallas_call(
                _probe_kernel,
                out_shape=jax.ShapeDtypeStruct((16, 128), jnp.float32),
                grid=(2,),
                in_specs=[pl.BlockSpec((8, 128), lambda i: (0, 0),
                                       pipeline_mode=pl.Buffered(1)),
                          pl.BlockSpec((8, 128), lambda i: (i, 0))],
                out_specs=pl.BlockSpec((8, 128), lambda i: (i, 0)),
            )(jnp.zeros((8, 128), jnp.float32), jnp.ones((16, 128), jnp.float32))
            jax.block_until_ready(out)
            _SINGLE_BUFFER_OK = True
        except Exception:
            _SINGLE_BUFFER_OK = False
    return _SINGLE_BUFFER_OK


def _vmem_cap_bytes():
    """Generation-aware VMEM budget: ~80% of physical (128 MiB v5e/v6e, 64 MiB v7x)."""
    try:
        cap = int(pltpu.get_tpu_info().vmem_capacity_bytes)
        return max(cap - cap // 5, 32 << 20)
    except Exception:
        return 64 << 20   # conservative default if the query is unavailable


# ----------------------------------- wrapper ------------------------------------------

def _prepare_params(params, num_heads):
    """Head-permute q/k/v columns, fold 1/sqrt(hs) into q, concat k||v, cast to bf16."""
    D = params["wq"].shape[0]
    I = params["w1"].shape[1]
    hs = D // num_heads
    scale = 1.0 / math.sqrt(hs)

    # torch transpose_for_scores: head h takes strided columns h::num_heads.
    # Permute so head h occupies the contiguous block [h*hs, (h+1)*hs).
    perm = jnp.arange(D).reshape(hs, num_heads).T.reshape(-1)

    def proj(w, b, s=1.0):
        return (w[:, perm] * s).astype(jnp.float32), (b[perm] * s).astype(jnp.float32)

    wq, bq = proj(params["wq"], params["bq"], scale)   # fold 1/sqrt(hs) into q
    wk, bk = proj(params["wk"], params["bk"])
    wv, bv = proj(params["wv"], params["bv"])
    wkv = jnp.concatenate([wk, wv], axis=1)            # [D, 2D]
    bkv = jnp.concatenate([bk, bv], axis=0)            # [2D]

    return dict(
        ln1w=params["ln1_w"].reshape(1, D).astype(jnp.float32),
        ln1b=params["ln1_b"].reshape(1, D).astype(jnp.float32),
        wq=wq.astype(jnp.bfloat16), bq=bq.reshape(1, D),
        wkv=wkv.astype(jnp.bfloat16), bkv=bkv.reshape(1, 2 * D),
        ln2w=params["ln2_w"].reshape(1, D).astype(jnp.float32),
        ln2b=params["ln2_b"].reshape(1, D).astype(jnp.float32),
        w1=params["w1"].astype(jnp.bfloat16),
        b1=params["b1"].reshape(1, I).astype(jnp.float32),
        w2=params["w2"].astype(jnp.bfloat16),
        b2=params["b2"].reshape(1, D).astype(jnp.float32),
    )


def _choose_tiling(S, target=128):
    """Pad S up and pick a query tile.

    Tq=128: keeps both v7x TensorCores busy at small batch, halves the f32 [H,Tq,S]
    scores / [Tq,I] slabs vs 256, and loses nothing on v5e's 128-wide MXU."""
    if S <= target:
        s_pad = -(-S // 8) * 8
        return s_pad, s_pad
    return -(-S // target) * target, target


def _vit_layer_call(x, p, *, num_heads, seq_tile, valid_len, single_buffer, out_dtype):
    B, S_pad, D = x.shape
    I = p["w1"].shape[1]
    H = num_heads
    hs = D // H
    Tq = seq_tile
    n_tiles = S_pad // Tq

    # Grid-constant weights/biases: single-buffered when this jax/Mosaic supports it
    # (double-buffering them is pure VMEM waste — matters for ViT-Large/Huge on v7x).
    const_kwargs = {"pipeline_mode": pl.Buffered(1)} if single_buffer else {}

    def const_spec(shape):
        return pl.BlockSpec(shape, lambda b, i: (0,) * len(shape), **const_kwargs)

    in_specs = [
        # Full (padded) sequence; block index is constant along the tile axis, so it is
        # DMA'd once per batch element and reused by every query tile.
        pl.BlockSpec((1, S_pad, D), lambda b, i: (b, 0, 0)),
        const_spec((1, D)), const_spec((1, D)),             # ln1 w, b
        const_spec((D, D)), const_spec((1, D)),             # wq, bq
        const_spec((D, 2 * D)), const_spec((1, 2 * D)),     # wkv, bkv
        const_spec((1, D)), const_spec((1, D)),             # ln2 w, b
        const_spec((D, I)), const_spec((1, I)),             # mlp dense
        const_spec((I, D)), const_spec((1, D)),             # mlp output_proj
    ]

    # Advisory cost estimate (K/V projection now amortized once per batch element).
    flops = int(B * (2 * S_pad * D * D              # q projection
                     + 4 * S_pad * D * D            # k/v projection (once per b)
                     + 4 * S_pad * S_pad * D        # QK^T + PV over heads
                     + 4 * S_pad * D * I))          # MLP
    transcendentals = int(B * (H * S_pad * S_pad + S_pad * I))
    w_bytes = (3 * D * D + 2 * D * I) * 2 + (6 * D + I) * 4
    bytes_accessed = int(2 * B * S_pad * D * 4 + w_bytes)

    # VMEM estimate: weights (x1 or x2 depending on buffering), pipelined activations,
    # K/V scratch and the main in-kernel temporaries; clamped to the generation cap.
    w_buf = w_bytes * (1 if single_buffer else 2)
    act_bytes = (2 * S_pad * D * 4                  # x (double-buffered)
                 + 2 * Tq * D * 4                   # out (double-buffered)
                 + 2 * S_pad * D * 2                # k/v bf16 scratch
                 + S_pad * D * 2 + 2 * S_pad * D * 4  # xn_full + kv projection temp
                 + 3 * H * Tq * S_pad * 4           # scores / exp / probs
                 + 2 * Tq * I * 4                   # h1
                 + 8 * Tq * D * 4)                  # misc per-tile temporaries
    vmem_limit = int(min(max(w_buf + act_bytes + (2 << 20), 8 << 20), _vmem_cap_bytes()))

    kernel = functools.partial(vit_layer_kernel, num_heads=num_heads, valid_len=valid_len)
    return pl.pallas_call(
        kernel,
        out_shape=jax.ShapeDtypeStruct((B, S_pad, D), out_dtype),
        grid=(B, n_tiles),
        in_specs=in_specs,
        out_specs=pl.BlockSpec((1, Tq, D), lambda b, i: (b, i, 0)),
        scratch_shapes=[pltpu.VMEM((S_pad, H, hs), jnp.bfloat16),
                        pltpu.VMEM((S_pad, H, hs), jnp.bfloat16)],
        compiler_params=pltpu.CompilerParams(
            # Tile axis is "arbitrary": the K/V scratch written at tile 0 is reused by the
            # later tiles of the same batch element. Batch stays "parallel" for megacore.
            dimension_semantics=("parallel", "arbitrary"),
            vmem_limit_bytes=vmem_limit),
        cost_estimate=pl.CostEstimate(flops=flops,
                                      transcendentals=transcendentals,
                                      bytes_accessed=bytes_accessed),
    )(x,
      p["ln1w"], p["ln1b"],
      p["wq"], p["bq"], p["wkv"], p["bkv"],
      p["ln2w"], p["ln2b"],
      p["w1"], p["b1"], p["w2"], p["b2"])


def vit_layer_pallas(x, params, num_heads, *, seq_tile=None, out_dtype=jnp.float32):
    B, S, D = x.shape
    p = _prepare_params(params, num_heads)

    s_pad, tq_auto = _choose_tiling(S)
    Tq = int(seq_tile) if seq_tile is not None else tq_auto
    if s_pad % Tq != 0:
        s_pad = -(-s_pad // Tq) * Tq
    assert Tq % 8 == 0 or Tq == s_pad, \
        "query tile must be a multiple of 8 (or equal the padded sequence length)"

    x_in = x if s_pad == S else jnp.pad(x, ((0, 0), (0, s_pad - S), (0, 0)))

    out = _vit_layer_call(x_in, p, num_heads=num_heads, seq_tile=Tq, valid_len=S,
                          single_buffer=_single_buffer_supported(), out_dtype=out_dtype)
    # Library path stays async (no block_until_ready); caller decides when to sync.
    return out if s_pad == S else out[:, :S, :]


# ----------------------------------- reference ----------------------------------------

def vit_layer_reference(x, params, num_heads):
    """Pure-JAX f32 reference reproducing the PyTorch module exactly."""
    B, S, D = x.shape
    hs = D // num_heads

    def ln(v, w, b):
        mu = v.mean(-1, keepdims=True)
        var = ((v - mu) ** 2).mean(-1, keepdims=True)
        return (v - mu) / jnp.sqrt(var + 1e-5) * w + b

    def t4s(t):  # PyTorch transpose_for_scores
        t = t.reshape(B, S, hs, num_heads)
        t = jnp.transpose(t, (0, 3, 2, 1))       # transpose(-1, 1)
        return jnp.transpose(t, (0, 1, 3, 2))    # transpose(-1, -2) -> [B, H, S, hs]

    xn = ln(x, params["ln1_w"], params["ln1_b"])
    q = t4s(xn @ params["wq"] + params["bq"])
    k = t4s(xn @ params["wk"] + params["bk"])
    v = t4s(xn @ params["wv"] + params["bv"])
    scores = jax.nn.softmax(q @ jnp.swapaxes(k, -1, -2) / math.sqrt(hs), axis=-1)
    attn = scores @ v
    attn = jnp.transpose(attn, (0, 2, 1, 3)).reshape(B, S, D)
    y = x + attn
    yn = ln(y, params["ln2_w"], params["ln2_b"])
    h1 = yn @ params["w1"] + params["b1"]
    h1 = h1 * jax.nn.sigmoid(h1)
    return y + (h1 @ params["w2"] + params["b2"])


def init_params(key, emb_dim, intermediate_size):
    ks = jax.random.split(key, 10)
    s = 0.05
    return {
        "ln1_w": 1.0 + s * jax.random.normal(ks[0], (emb_dim,), jnp.float32),
        "ln1_b": s * jax.random.normal(ks[1], (emb_dim,), jnp.float32),
        "ln2_w": 1.0 + s * jax.random.normal(ks[2], (emb_dim,), jnp.float32),
        "ln2_b": s * jax.random.normal(ks[3], (emb_dim,), jnp.float32),
        "wq": s * jax.random.normal(ks[4], (emb_dim, emb_dim), jnp.float32),
        "bq": s * jax.random.normal(ks[5], (emb_dim,), jnp.float32),
        "wk": s * jax.random.normal(ks[6], (emb_dim, emb_dim), jnp.float32),
        "bk": s * jax.random.normal(ks[7], (emb_dim,), jnp.float32),
        "wv": s * jax.random.normal(ks[8], (emb_dim, emb_dim), jnp.float32),
        "bv": s * jax.random.normal(ks[9], (emb_dim,), jnp.float32),
        "w1": s * jax.random.normal(jax.random.fold_in(key, 100),
                                    (emb_dim, intermediate_size), jnp.float32),
        "b1": s * jax.random.normal(jax.random.fold_in(key, 101),
                                    (intermediate_size,), jnp.float32),
        "w2": s * jax.random.normal(jax.random.fold_in(key, 102),
                                    (intermediate_size, emb_dim), jnp.float32),
        "b2": s * jax.random.normal(jax.random.fold_in(key, 103),
                                    (emb_dim,), jnp.float32),
    }


if __name__ == "__main__":
    num_heads = 4
    D, I = 32, 64

    key = jax.random.PRNGKey(0)
    kx, kp = jax.random.split(key)
    params = init_params(kp, D, I)

    # 1) basic path: single query tile per batch element
    x1 = jax.random.normal(kx, (2, 8, D), jnp.float32)
    out1 = jax.block_until_ready(vit_layer_pallas(x1, params, num_heads))
    ref1 = vit_layer_reference(x1, params, num_heads)
    assert out1.shape == x1.shape
    err1 = float(jnp.max(jnp.abs(out1 - ref1)))
    assert jnp.allclose(out1, ref1, rtol=2e-2, atol=2e-2), f"max abs err {err1}"

    # 2) multi-tile path: K/V computed once per batch element and reused by the 2nd tile
    x2 = jax.random.normal(jax.random.fold_in(key, 7), (2, 16, D), jnp.float32)
    out2 = jax.block_until_ready(vit_layer_pallas(x2, params, num_heads, seq_tile=8))
    ref2 = vit_layer_reference(x2, params, num_heads)
    err2 = float(jnp.max(jnp.abs(out2 - ref2)))
    assert jnp.allclose(out2, ref2, rtol=2e-2, atol=2e-2), f"max abs err {err2}"

    # 3) padded/masked path: S=12 (not a multiple of 8) -> padded to 16, key cols masked
    x3 = jax.random.normal(jax.random.fold_in(key, 11), (2, 12, D), jnp.float32)
    out3 = jax.block_until_ready(vit_layer_pallas(x3, params, num_heads))
    ref3 = vit_layer_reference(x3, params, num_heads)
    assert out3.shape == x3.shape
    err3 = float(jnp.max(jnp.abs(out3 - ref3)))
    assert jnp.allclose(out3, ref3, rtol=2e-2, atol=2e-2), f"max abs err {err3}"

    print("KERNEL_OK")
</pallas_src>

<mosaic_0001>
module attributes {stable_mosaic.version = 11 : i64} {
  func.func @_probe_kernel(%arg0: i32, %arg1: memref<8x128xf32, #tpu.memory_space<vmem>>, %arg2: memref<8x128xf32, #tpu.memory_space<vmem>>, %arg3: memref<8x128xf32, #tpu.memory_space<vmem>>) attributes {dimension_semantics = [#tpu.dimension_semantics<arbitrary>], iteration_bounds = array<i64: 2>, scalar_prefetch = 0 : i64, scratch_operands = 0 : i64, tpu.core_type = #tpu.core_type<tc>, window_params = [{pipeline_mode = #tpu.pipeline_mode<synchronous>, transform_indices = @transform_0, window_bounds = array<i64: 8, 128>}, {transform_indices = @transform_1, window_bounds = array<i64: 8, 128>}, {transform_indices = @transform_2, window_bounds = array<i64: 8, 128>}]} {
    %c0 = arith.constant 0 : index
    %c0_0 = arith.constant 0 : index
    %0 = vector.load %arg1[%c0, %c0_0] : memref<8x128xf32, #tpu.memory_space<vmem>>, vector<8x128xf32>
    %c0_1 = arith.constant 0 : index
    %c0_2 = arith.constant 0 : index
    %1 = vector.load %arg2[%c0_1, %c0_2] : memref<8x128xf32, #tpu.memory_space<vmem>>, vector<8x128xf32>
    %2 = arith.addf %0, %1 : vector<8x128xf32>
    %c0_3 = arith.constant 0 : index
    %c0_4 = arith.constant 0 : index
    %3 = vector.load %arg3[%c0_3, %c0_4] : memref<8x128xf32, #tpu.memory_space<vmem>>, vector<8x128xf32>
    tpu.vector_store %arg3[%c0_3, %c0_4], %2 {strides = array<i32>} : memref<8x128xf32, #tpu.memory_space<vmem>>, vector<8x128xf32>,
    return
  }
  func.func @transform_0(%arg0: i32) -> (i32, i32) {
    %c0_i32 = arith.constant 0 : i32
    %c0_i32_0 = arith.constant 0 : i32
    %c0_i32_1 = arith.constant 0 : i32
    return %c0_i32, %c0_i32_0 : i32, i32
  }
  func.func @transform_1(%arg0: i32) -> (i32, i32) {
    %c0_i32 = arith.constant 0 : i32
    %c0_i32_0 = arith.constant 0 : i32
    return %arg0, %c0_i32 : i32, i32
  }
  func.func @transform_2(%arg0: i32) -> (i32, i32) {
    %c0_i32 = arith.constant 0 : i32
    %c0_i32_0 = arith.constant 0 : i32
    return %arg0, %c0_i32 : i32, i32
  }
}

module attributes {stable_mosaic.version = 11 : i64} {
  func.func @vit_layer_kernel(%arg0: i32, %arg1: i32, %arg2: memref<1x8x32xf32, #tpu.memory_space<vmem>>, %arg3: memref<1x32xf32, #tpu.memory_space<vmem>>, %arg4: memref<1x32xf32, #tpu.memory_space<vmem>>, %arg5: memref<32x32xbf16, #tpu.memory_space<vmem>>, %arg6: memref<1x32xf32, #tpu.memory_space<vmem>>, %arg7: memref<32x64xbf16, #tpu.memory_space<vmem>>, %arg8: memref<1x64xf32, #tpu.memory_space<vmem>>, %arg9: memref<1x32xf32, #tpu.memory_space<vmem>>, %arg10: memref<1x32xf32, #tpu.memory_space<vmem>>, %arg11: memref<32x64xbf16, #tpu.memory_space<vmem>>, %arg12: memref<1x64xf32, #tpu.memory_space<vmem>>, %arg13: memref<64x32xbf16, #tpu.memory_space<vmem>>, %arg14: memref<1x32xf32, #tpu.memory_space<vmem>>, %arg15: memref<1x8x32xf32, #tpu.memory_space<vmem>>, %arg16: memref<8x4x8xbf16, #tpu.memory_space<vmem>>, %arg17: memref<8x4x8xbf16, #tpu.memory_space<vmem>>) attributes {dimension_semantics = [#tpu.dimension_semantics<parallel>, #tpu.dimension_semantics<arbitrary>], iteration_bounds = array<i64: 2, 1>, scalar_prefetch = 0 : i64, scratch_operands = 2 : i64, tpu.core_type = #tpu.core_type<tc>, window_params = [{transform_indices = @transform_0, window_bounds = array<i64: 1, 8, 32>}, {pipeline_mode = #tpu.pipeline_mode<synchronous>, transform_indices = @transform_1, window_bounds = array<i64: 1, 32>}, {pipeline_mode = #tpu.pipeline_mode<synchronous>, transform_indices = @transform_2, window_bounds = array<i64: 1, 32>}, {pipeline_mode = #tpu.pipeline_mode<synchronous>, transform_indices = @transform_3, window_bounds = array<i64: 32, 32>}, {pipeline_mode = #tpu.pipeline_mode<synchronous>, transform_indices = @transform_4, window_bounds = array<i64: 1, 32>}, {pipeline_mode = #tpu.pipeline_mode<synchronous>, transform_indices = @transform_5, window_bounds = array<i64: 32, 64>}, {pipeline_mode = #tpu.pipeline_mode<synchronous>, transform_indices = @transform_6, window_bounds = array<i64: 1, 64>}, {pipeline_mode = #tpu.pipeline_mode<synchronous>, transform_indices = @transform_7, window_bounds = array<i64: 1, 32>}, {pipeline_mode = #tpu.pipeline_mode<synchronous>, transform_indices = @transform_8, window_bounds = array<i64: 1, 32>}, {pipeline_mode = #tpu.pipeline_mode<synchronous>, transform_indices = @transform_9, window_bounds = array<i64: 32, 64>}, {pipeline_mode = #tpu.pipeline_mode<synchronous>, transform_indices = @transform_10, window_bounds = array<i64: 1, 64>}, {pipeline_mode = #tpu.pipeline_mode<synchronous>, transform_indices = @transform_11, window_bounds = array<i64: 64, 32>}, {pipeline_mode = #tpu.pipeline_mode<synchronous>, transform_indices = @transform_12, window_bounds = array<i64: 1, 32>}, {transform_indices = @transform_13, window_bounds = array<i64: 1, 8, 32>}]} {
    %c0 = arith.constant 0 : index
    %c0_0 = arith.constant 0 : index
    %0 = vector.load %arg3[%c0, %c0_0] : memref<1x32xf32, #tpu.memory_space<vmem>>, vector<1x32xf32>
    %c0_1 = arith.constant 0 : index
    %c0_2 = arith.constant 0 : index
    %1 = vector.load %arg4[%c0_1, %c0_2] : memref<1x32xf32, #tpu.memory_space<vmem>>, vector<1x32xf32>
    %c0_i32 = arith.constant 0 : i32
    %2 = arith.cmpi eq, %arg1, %c0_i32 : i32
    %3 = arith.extui %2 : i1 to i32
    %c0_i32_3 = arith.constant 0 : i32
    %4 = arith.cmpi ne, %3, %c0_i32_3 : i32
    scf.if %4 {
      %c0_48 = arith.constant 0 : index
      %c0_49 = arith.constant 0 : index
      %c0_50 = arith.constant 0 : index
      %104 = vector.load %arg2[%c0_48, %c0_49, %c0_50] : memref<1x8x32xf32, #tpu.memory_space<vmem>>, vector<1x8x32xf32>
      %105 = vector.shape_cast %104 : vector<1x8x32xf32> to vector<8x32xf32>
      %cst_51 = arith.constant dense<0.000000e+00> : vector<8xf32>
      %106 = vector.multi_reduction <add>, %105, %cst_51 [1] : vector<8x32xf32> to vector<8xf32>
      %107 = vector.shape_cast %106 : vector<8xf32> to vector<8x1xf32>
      %108 = arith.mulf %105, %105 : vector<8x32xf32>
      %cst_52 = arith.constant dense<0.000000e+00> : vector<8xf32>
      %109 = vector.multi_reduction <add>, %108, %cst_52 [1] : vector<8x32xf32> to vector<8xf32>
      %110 = vector.shape_cast %109 : vector<8xf32> to vector<8x1xf32>
      %cst_53 = arith.constant 3.200000e+01 : f32
      %111 = vector.broadcast %cst_53 : f32 to vector<8x1xf32>
      %112 = arith.divf %107, %111 : vector<8x1xf32>
      %cst_54 = arith.constant 3.200000e+01 : f32
      %113 = vector.broadcast %cst_54 : f32 to vector<8x1xf32>
      %114 = arith.divf %110, %113 : vector<8x1xf32>
      %115 = arith.mulf %112, %112 : vector<8x1xf32>
      %116 = arith.subf %114, %115 : vector<8x1xf32>
      %117 = vector.broadcast %112 : vector<8x1xf32> to vector<8x32xf32>
      %118 = arith.subf %105, %117 : vector<8x32xf32>
      %cst_55 = arith.constant 9.99999974E-6 : f32
      %119 = vector.broadcast %cst_55 : f32 to vector<8x1xf32>
      %120 = arith.addf %116, %119 : vector<8x1xf32>
      %121 = math.rsqrt %120 : vector<8x1xf32>
      %122 = vector.broadcast %121 : vector<8x1xf32> to vector<8x32xf32>
      %123 = arith.mulf %118, %122 : vector<8x32xf32>
      %124 = vector.broadcast %0 : vector<1x32xf32> to vector<8x32xf32>
      %125 = arith.mulf %123, %124 : vector<8x32xf32>
      %126 = vector.broadcast %1 : vector<1x32xf32> to vector<8x32xf32>
      %127 = arith.addf %125, %126 : vector<8x32xf32>
      %128 = arith.truncf %127 : vector<8x32xf32> to vector<8x32xbf16>
      %c0_56 = arith.constant 0 : index
      %c0_57 = arith.constant 0 : index
      %129 = vector.load %arg7[%c0_56, %c0_57] : memref<32x64xbf16, #tpu.memory_space<vmem>>, vector<32x64xbf16>
      %cst_58 = arith.constant dense<0.000000e+00> : vector<8x64xf32>
      %130 = tpu.matmul %128, %129, %cst_58 {dimension_numbers = #tpu.dot_dimension_numbers<[1], [0], [0], [1], [0, 0, 1, 1], [], []>} : vector<8x32xbf16>, vector<32x64xbf16>, vector<8x64xf32> -> vector<8x64xf32>
      %c0_59 = arith.constant 0 : index
      %c0_60 = arith.constant 0 : index
      %131 = vector.load %arg8[%c0_59, %c0_60] : memref<1x64xf32, #tpu.memory_space<vmem>>, vector<1x64xf32>
      %132 = vector.broadcast %131 : vector<1x64xf32> to vector<8x64xf32>
      %133 = arith.addf %130, %132 : vector<8x64xf32>
      %134 = vector.extract_strided_slice %133 {offsets = [0, 0], sizes = [8, 32], strides = [1, 1]} : vector<8x64xf32> to vector<8x32xf32>
      %135 = vector.shape_cast %134 : vector<8x32xf32> to vector<8x4x8xf32>
      %136 = arith.truncf %135 : vector<8x4x8xf32> to vector<8x4x8xbf16>
      %c0_61 = arith.constant 0 : index
      %c0_62 = arith.constant 0 : index
      %c0_63 = arith.constant 0 : index
      %137 = vector.load %arg16[%c0_61, %c0_62, %c0_63] : memref<8x4x8xbf16, #tpu.memory_space<vmem>>, vector<8x4x8xbf16>
      tpu.vector_store %arg16[%c0_61, %c0_62, %c0_63], %136 {strides = array<i32>} : memref<8x4x8xbf16, #tpu.memory_space<vmem>>, vector<8x4x8xbf16>,
      %138 = vector.extract_strided_slice %133 {offsets = [0, 32], sizes = [8, 32], strides = [1, 1]} : vector<8x64xf32> to vector<8x32xf32>
      %139 = vector.shape_cast %138 : vector<8x32xf32> to vector<8x4x8xf32>
      %140 = arith.truncf %139 : vector<8x4x8xf32> to vector<8x4x8xbf16>
      %c0_64 = arith.constant 0 : index
      %c0_65 = arith.constant 0 : index
      %c0_66 = arith.constant 0 : index
      %141 = vector.load %arg17[%c0_64, %c0_65, %c0_66] : memref<8x4x8xbf16, #tpu.memory_space<vmem>>, vector<8x4x8xbf16>
      tpu.vector_store %arg17[%c0_64, %c0_65, %c0_66], %140 {strides = array<i32>} : memref<8x4x8xbf16, #tpu.memory_space<vmem>>, vector<8x4x8xbf16>,
    } else {
    }
    %c8_i32 = arith.constant 8 : i32
    %5 = arith.muli %arg1, %c8_i32 : i32
    %6 = tpu.assume_multiple %5, 8 : i32
    %c0_4 = arith.constant 0 : index
    %7 = arith.index_cast %6 : i32 to index
    %c0_5 = arith.constant 0 : index
    %8 = vector.load %arg2[%c0_4, %7, %c0_5] : memref<1x8x32xf32, #tpu.memory_space<vmem>>, vector<1x8x32xf32>
    %9 = vector.shape_cast %8 : vector<1x8x32xf32> to vector<8x32xf32>
    %cst = arith.constant dense<0.000000e+00> : vector<8xf32>
    %10 = vector.multi_reduction <add>, %9, %cst [1] : vector<8x32xf32> to vector<8xf32>
    %11 = vector.shape_cast %10 : vector<8xf32> to vector<8x1xf32>
    %12 = arith.mulf %9, %9 : vector<8x32xf32>
    %cst_6 = arith.constant dense<0.000000e+00> : vector<8xf32>
    %13 = vector.multi_reduction <add>, %12, %cst_6 [1] : vector<8x32xf32> to vector<8xf32>
    %14 = vector.shape_cast %13 : vector<8xf32> to vector<8x1xf32>
    %cst_7 = arith.constant 3.200000e+01 : f32
    %15 = vector.broadcast %cst_7 : f32 to vector<8x1xf32>
    %16 = arith.divf %11, %15 : vector<8x1xf32>
    %cst_8 = arith.constant 3.200000e+01 : f32
    %17 = vector.broadcast %cst_8 : f32 to vector<8x1xf32>
    %18 = arith.divf %14, %17 : vector<8x1xf32>
    %19 = arith.mulf %16, %16 : vector<8x1xf32>
    %20 = arith.subf %18, %19 : vector<8x1xf32>
    %21 = vector.broadcast %16 : vector<8x1xf32> to vector<8x32xf32>
    %22 = arith.subf %9, %21 : vector<8x32xf32>
    %cst_9 = arith.constant 9.99999974E-6 : f32
    %23 = vector.broadcast %cst_9 : f32 to vector<8x1xf32>
    %24 = arith.addf %20, %23 : vector<8x1xf32>
    %25 = math.rsqrt %24 : vector<8x1xf32>
    %26 = vector.broadcast %25 : vector<8x1xf32> to vector<8x32xf32>
    %27 = arith.mulf %22, %26 : vector<8x32xf32>
    %28 = vector.broadcast %0 : vector<1x32xf32> to vector<8x32xf32>
    %29 = arith.mulf %27, %28 : vector<8x32xf32>
    %30 = vector.broadcast %1 : vector<1x32xf32> to vector<8x32xf32>
    %31 = arith.addf %29, %30 : vector<8x32xf32>
    %32 = arith.truncf %31 : vector<8x32xf32> to vector<8x32xbf16>
    %c0_10 = arith.constant 0 : index
    %c0_11 = arith.constant 0 : index
    %33 = vector.load %arg5[%c0_10, %c0_11] : memref<32x32xbf16, #tpu.memory_space<vmem>>, vector<32x32xbf16>
    %cst_12 = arith.constant dense<0.000000e+00> : vector<8x32xf32>
    %34 = tpu.matmul %32, %33, %cst_12 {dimension_numbers = #tpu.dot_dimension_numbers<[1], [0], [0], [1], [0, 0, 1, 1], [], []>} : vector<8x32xbf16>, vector<32x32xbf16>, vector<8x32xf32> -> vector<8x32xf32>
    %c0_13 = arith.constant 0 : index
    %c0_14 = arith.constant 0 : index
    %35 = vector.load %arg6[%c0_13, %c0_14] : memref<1x32xf32, #tpu.memory_space<vmem>>, vector<1x32xf32>
    %36 = vector.broadcast %35 : vector<1x32xf32> to vector<8x32xf32>
    %37 = arith.addf %34, %36 : vector<8x32xf32>
    %38 = vector.shape_cast %37 : vector<8x32xf32> to vector<8x4x8xf32>
    %39 = arith.truncf %38 : vector<8x4x8xf32> to vector<8x4x8xbf16>
    %c0_15 = arith.constant 0 : index
    %c0_16 = arith.constant 0 : index
    %c0_17 = arith.constant 0 : index
    %40 = vector.load %arg16[%c0_15, %c0_16, %c0_17] : memref<8x4x8xbf16, #tpu.memory_space<vmem>>, vector<8x4x8xbf16>
    %c0_18 = arith.constant 0 : index
    %c0_19 = arith.constant 0 : index
    %c0_20 = arith.constant 0 : index
    %41 = vector.load %arg17[%c0_18, %c0_19, %c0_20] : memref<8x4x8xbf16, #tpu.memory_space<vmem>>, vector<8x4x8xbf16>
    "tpu.trace_start"() <{level = 10 : i32, message = "qhd,khd->hqk"}> : () -> ()
    %cst_21 = arith.constant dense<0.000000e+00> : vector<4x8x8xf32>
    %42 = tpu.matmul %39, %40, %cst_21 {dimension_numbers = #tpu.dot_dimension_numbers<[2], [2], [0], [0], [0, 1, 0, 0, 1, 0], [1], [1]>} : vector<8x4x8xbf16>, vector<8x4x8xbf16>, vector<4x8x8xf32> -> vector<4x8x8xf32>
    "tpu.trace_stop"() : () -> ()
    %cst_22 = arith.constant dense<0xFF800000> : vector<4x8xf32>
    %43 = vector.multi_reduction <maximumf>, %42, %cst_22 [2] : vector<4x8x8xf32> to vector<4x8xf32>
    %44 = vector.shape_cast %43 : vector<4x8xf32> to vector<4x8x1xf32>
    %45 = vector.broadcast %44 : vector<4x8x1xf32> to vector<4x8x8xf32>
    %46 = arith.subf %42, %45 : vector<4x8x8xf32>
    %47 = math.exp %46 : vector<4x8x8xf32>
    %cst_23 = arith.constant dense<0.000000e+00> : vector<4x8xf32>
    %48 = vector.multi_reduction <add>, %47, %cst_23 [2] : vector<4x8x8xf32> to vector<4x8xf32>
    %49 = vector.shape_cast %48 : vector<4x8xf32> to vector<4x8x1xf32>
    %50 = tpu.reciprocal %49 {approx = true} : vector<4x8x1xf32> -> vector<4x8x1xf32>
    %51 = vector.broadcast %50 : vector<4x8x1xf32> to vector<4x8x8xf32>
    %52 = arith.mulf %47, %51 : vector<4x8x8xf32>
    %53 = arith.truncf %52 : vector<4x8x8xf32> to vector<4x8x8xbf16>
    "tpu.trace_start"() <{level = 10 : i32, message = "hqk,khd->qhd"}> : () -> ()
    %cst_24 = arith.constant dense<0.000000e+00> : vector<4x8x8xf32>
    %54 = tpu.matmul %41, %53, %cst_24 {dimension_numbers = #tpu.dot_dimension_numbers<[0], [2], [2], [1], [0, 1, 0, 2, 1, 1], [1], [0]>} : vector<8x4x8xbf16>, vector<4x8x8xbf16>, vector<4x8x8xf32> -> vector<4x8x8xf32>
    %55 = tpu.transpose %54, [2, 0, 1] : vector<4x8x8xf32> -> vector<8x4x8xf32>
    "tpu.trace_stop"() : () -> ()
    %56 = vector.shape_cast %55 : vector<8x4x8xf32> to vector<8x32xf32>
    %57 = arith.addf %9, %56 : vector<8x32xf32>
    %c0_25 = arith.constant 0 : index
    %c0_26 = arith.constant 0 : index
    %58 = vector.load %arg9[%c0_25, %c0_26] : memref<1x32xf32, #tpu.memory_space<vmem>>, vector<1x32xf32>
    %c0_27 = arith.constant 0 : index
    %c0_28 = arith.constant 0 : index
    %59 = vector.load %arg10[%c0_27, %c0_28] : memref<1x32xf32, #tpu.memory_space<vmem>>, vector<1x32xf32>
    %cst_29 = arith.constant dense<0.000000e+00> : vector<8xf32>
    %60 = vector.multi_reduction <add>, %57, %cst_29 [1] : vector<8x32xf32> to vector<8xf32>
    %61 = vector.shape_cast %60 : vector<8xf32> to vector<8x1xf32>
    %62 = arith.mulf %57, %57 : vector<8x32xf32>
    %cst_30 = arith.constant dense<0.000000e+00> : vector<8xf32>
    %63 = vector.multi_reduction <add>, %62, %cst_30 [1] : vector<8x32xf32> to vector<8xf32>
    %64 = vector.shape_cast %63 : vector<8xf32> to vector<8x1xf32>
    %cst_31 = arith.constant 3.200000e+01 : f32
    %65 = vector.broadcast %cst_31 : f32 to vector<8x1xf32>
    %66 = arith.divf %61, %65 : vector<8x1xf32>
    %cst_32 = arith.constant 3.200000e+01 : f32
    %67 = vector.broadcast %cst_32 : f32 to vector<8x1xf32>
    %68 = arith.divf %64, %67 : vector<8x1xf32>
    %69 = arith.mulf %66, %66 : vector<8x1xf32>
    %70 = arith.subf %68, %69 : vector<8x1xf32>
    %71 = vector.broadcast %66 : vector<8x1xf32> to vector<8x32xf32>
    %72 = arith.subf %57, %71 : vector<8x32xf32>
    %cst_33 = arith.constant 9.99999974E-6 : f32
    %73 = vector.broadcast %cst_33 : f32 to vector<8x1xf32>
    %74 = arith.addf %70, %73 : vector<8x1xf32>
    %75 = math.rsqrt %74 : vector<8x1xf32>
    %76 = vector.broadcast %75 : vector<8x1xf32> to vector<8x32xf32>
    %77 = arith.mulf %72, %76 : vector<8x32xf32>
    %78 = vector.broadcast %58 : vector<1x32xf32> to vector<8x32xf32>
    %79 = arith.mulf %77, %78 : vector<8x32xf32>
    %80 = vector.broadcast %59 : vector<1x32xf32> to vector<8x32xf32>
    %81 = arith.addf %79, %80 : vector<8x32xf32>
    %82 = arith.truncf %81 : vector<8x32xf32> to vector<8x32xbf16>
    %c0_34 = arith.constant 0 : index
    %c0_35 = arith.constant 0 : index
    %83 = vector.load %arg11[%c0_34, %c0_35] : memref<32x64xbf16, #tpu.memory_space<vmem>>, vector<32x64xbf16>
    %cst_36 = arith.constant dense<0.000000e+00> : vector<8x64xf32>
    %84 = tpu.matmul %82, %83, %cst_36 {dimension_numbers = #tpu.dot_dimension_numbers<[1], [0], [0], [1], [0, 0, 1, 1], [], []>} : vector<8x32xbf16>, vector<32x64xbf16>, vector<8x64xf32> -> vector<8x64xf32>
    %c0_37 = arith.constant 0 : index
    %c0_38 = arith.constant 0 : index
    %85 = vector.load %arg12[%c0_37, %c0_38] : memref<1x64xf32, #tpu.memory_space<vmem>>, vector<1x64xf32>
    %86 = vector.broadcast %85 : vector<1x64xf32> to vector<8x64xf32>
    %87 = arith.addf %84, %86 : vector<8x64xf32>
    %88 = arith.negf %87 : vector<8x64xf32>
    %89 = math.exp %88 : vector<8x64xf32>
    %cst_39 = arith.constant 1.000000e+00 : f32
    %90 = vector.broadcast %cst_39 : f32 to vector<8x64xf32>
    %91 = arith.addf %90, %89 : vector<8x64xf32>
    %92 = arith.divf %90, %91 : vector<8x64xf32>
    %93 = arith.mulf %87, %92 : vector<8x64xf32>
    %94 = arith.truncf %93 : vector<8x64xf32> to vector<8x64xbf16>
    %c0_40 = arith.constant 0 : index
    %c0_41 = arith.constant 0 : index
    %95 = vector.load %arg13[%c0_40, %c0_41] : memref<64x32xbf16, #tpu.memory_space<vmem>>, vector<64x32xbf16>
    %cst_42 = arith.constant dense<0.000000e+00> : vector<8x32xf32>
    %96 = tpu.matmul %94, %95, %cst_42 {dimension_numbers = #tpu.dot_dimension_numbers<[1], [0], [0], [1], [0, 0, 1, 1], [], []>} : vector<8x64xbf16>, vector<64x32xbf16>, vector<8x32xf32> -> vector<8x32xf32>
    %c0_43 = arith.constant 0 : index
    %c0_44 = arith.constant 0 : index
    %97 = vector.load %arg14[%c0_43, %c0_44] : memref<1x32xf32, #tpu.memory_space<vmem>>, vector<1x32xf32>
    %98 = vector.broadcast %97 : vector<1x32xf32> to vector<8x32xf32>
    %99 = arith.addf %96, %98 : vector<8x32xf32>
    %100 = arith.addf %57, %99 : vector<8x32xf32>
    %c0_45 = arith.constant 0 : index
    %c0_46 = arith.constant 0 : index
    %c0_47 = arith.constant 0 : index
    %101 = vector.load %arg15[%c0_45, %c0_46, %c0_47] : memref<1x8x32xf32, #tpu.memory_space<vmem>>, vector<1x8x32xf32>
    %102 = vector.shape_cast %101 : vector<1x8x32xf32> to vector<8x32xf32>
    %103 = vector.shape_cast %100 : vector<8x32xf32> to vector<1x8x32xf32>
    tpu.vector_store %arg15[%c0_45, %c0_46, %c0_47], %103 {strides = array<i32>} : memref<1x8x32xf32, #tpu.memory_space<vmem>>, vector<1x8x32xf32>,
    return
  }
  func.func @transform_0(%arg0: i32, %arg1: i32) -> (i32, i32, i32) {
    %c0_i32 = arith.constant 0 : i32
    %c0_i32_0 = arith.constant 0 : i32
    %c0_i32_1 = arith.constant 0 : i32
    return %arg0, %c0_i32, %c0_i32_0 : i32, i32, i32
  }
  func.func @transform_1(%arg0: i32, %arg1: i32) -> (i32, i32) {
    %c0_i32 = arith.constant 0 : i32
    %c0_i32_0 = arith.constant 0 : i32
    %c0_i32_1 = arith.constant 0 : i32
    return %c0_i32, %c0_i32_0 : i32, i32
  }
  func.func @transform_2(%arg0: i32, %arg1: i32) -> (i32, i32) {
    %c0_i32 = arith.constant 0 : i32
    %c0_i32_0 = arith.constant 0 : i32
    %c0_i32_1 = arith.constant 0 : i32
    return %c0_i32, %c0_i32_0 : i32, i32
  }
  func.func @transform_3(%arg0: i32, %arg1: i32) -> (i32, i32) {
    %c0_i32 = arith.constant 0 : i32
    %c0_i32_0 = arith.constant 0 : i32
    %c0_i32_1 = arith.constant 0 : i32
    return %c0_i32, %c0_i32_0 : i32, i32
  }
  func.func @transform_4(%arg0: i32, %arg1: i32) -> (i32, i32) {
    %c0_i32 = arith.constant 0 : i32
    %c0_i32_0 = arith.constant 0 : i32
    %c0_i32_1 = arith.constant 0 : i32
    return %c0_i32, %c0_i32_0 : i32, i32
  }
  func.func @transform_5(%arg0: i32, %arg1: i32) -> (i32, i32) {
    %c0_i32 = arith.constant 0 : i32
    %c0_i32_0 = arith.constant 0 : i32
    %c0_i32_1 = arith.constant 0 : i32
    return %c0_i32, %c0_i32_0 : i32, i32
  }
  func.func @transform_6(%arg0: i32, %arg1: i32) -> (i32, i32) {
    %c0_i32 = arith.constant 0 : i32
    %c0_i32_0 = arith.constant 0 : i32
    %c0_i32_1 = arith.constant 0 : i32
    return %c0_i32, %c0_i32_0 : i32, i32
  }
  func.func @transform_7(%arg0: i32, %arg1: i32) -> (i32, i32) {
    %c0_i32 = arith.constant 0 : i32
    %c0_i32_0 = arith.constant 0 : i32
    %c0_i32_1 = arith.constant 0 : i32
    return %c0_i32, %c0_i32_0 : i32, i32
  }
  func.func @transform_8(%arg0: i32, %arg1: i32) -> (i32, i32) {
    %c0_i32 = arith.constant 0 : i32
    %c0_i32_0 = arith.constant 0 : i32
    %c0_i32_1 = arith.constant 0 : i32
    return %c0_i32, %c0_i32_0 : i32, i32
  }
  func.func @transform_9(%arg0: i32, %arg1: i32) -> (i32, i32) {
    %c0_i32 = arith.constant 0 : i32
    %c0_i32_0 = arith.constant 0 : i32
    %c0_i32_1 = arith.constant 0 : i32
    return %c0_i32, %c0_i32_0 : i32, i32
  }
  func.func @transform_10(%arg0: i32, %arg1: i32) -> (i32, i32) {
    %c0_i32 = arith.constant 0 : i32
    %c0_i32_0 = arith.constant 0 : i32
    %c0_i32_1 = arith.constant 0 : i32
    return %c0_i32, %c0_i32_0 : i32, i32
  }
  func.func @transform_11(%arg0: i32, %arg1: i32) -> (i32, i32) {
    %c0_i32 = arith.constant 0 : i32
    %c0_i32_0 = arith.constant 0 : i32
    %c0_i32_1 = arith.constant 0 : i32
    return %c0_i32, %c0_i32_0 : i32, i32
  }
  func.func @transform_12(%arg0: i32, %arg1: i32) -> (i32, i32) {
    %c0_i32 = arith.constant 0 : i32
    %c0_i32_0 = arith.constant 0 : i32
    %c0_i32_1 = arith.constant 0 : i32
    return %c0_i32, %c0_i32_0 : i32, i32
  }
  func.func @transform_13(%arg0: i32, %arg1: i32) -> (i32, i32, i32) {
    %c0_i32 = arith.constant 0 : i32
    %c0_i32_0 = arith.constant 0 : i32
    return %arg0, %arg1, %c0_i32 : i32, i32, i32
  }
}

</mosaic_0001>

<bundles_post_ra>
// kernel: tpu_custom_call.1
= control target key start
LH: loop header
LB: loop body
LE: loop exit
PB: predicated region body
PF: predicated region fallthrough
CT: control target
= control target key end

     0   :  { %7 = vsyncpa [#allocation3], 0  ;;  %s635_s0 = inlined_call_operand.hbm [shape: f32[8,128], index: 0, kind: input, shape index: {}]   ;;  %s636_s1 = inlined_call_operand.hbm [shape: f32[16,128], index: 1, kind: input, shape index: {}]   ;;  %s637_s2 = inlined_call_operand.hbm [shape: f32[16,128], index: 2, kind: output, shape index: {}]  }
   0x1   :  { %8 = vsyncpa [#allocation6], 0 }
   0x2   :  { %10 = vsyncpa [#allocation6 + $0x1], 0 }
   0x3   :  { %11 = vsyncpa [#allocation4], 0 }
   0x4   :  { %13 = vsyncpa [#allocation4 + $0x1], 0  ;;  %s497_s9 = smov 0   ;;  %s499_s10 = smov 0  }
   0x5   :  { %s501_s11 = smov 0   ;;  %s503_s12 = smov 0  }
   0x6 LB: > { %s518_s13 = sadd.s32 4294967295, %s479_s12   ;;  %s278_s14 = sadd.s32 4294967294, %s479_s12   ;;  %s479_s12 = sphi %s503_s12, %s647_s12   ;;  %s475_s11 = sphi %s501_s11, %s646_s11   ;;  %s471_s10 = sphi %s499_s10, %s645_s10   ;;  %s467_s9 = sphi %s497_s9, %s644_s9  }
   0x7   : > { %p60_p0 = scmp.ne.s32.totalorder %s471_s10, %s467_s9  ;;  %p61_p1 = scmp.eq.s32.totalorder %s518_s13, 0 }
   0x8   : > { %p84_p2 = scmp.eq.s32.totalorder %s518_s13, 1  ;;  %p90_p3 = scmp.eq.s32.totalorder %s278_s14, 1 }
   0x9   : > { %p527_p4 = por %p61_p1, %p60_p0  ;;  %p279_p5 = scmp.ge.s32.totalorder %s479_s12, 1 }
   0xa   : > { %p532_p6 = por %p90_p3, %p60_p0  ;;  %p97_p7 = scmp.lt.s32.totalorder %s479_s12, 3 }
   0xb   : > { %s109_s19 = sshll.u32 %s635_s0, 4  ;;  %s481_s21 = smov [#allocation2]   ;;  %s110_s19 = int_to_ptr.hbm [resolvable:$true] %s109_s19 }
   0xc   : > { %p540_p8 = pnand %p279_p5, %p97_p7  ;;  %s111_s22 = sshll.u32 %s481_s21, 4  ;;  %s112_s22 = int_to_ptr.vmem [resolvable:$true] %s111_s22 }
   0xd   : > { %s550_s23 = sadd.s32 1, %s479_s12   ;;  %s47_s24 = sadd.s32 1, %s475_s11 }
   0xe   : > { %p300_p10 = pneg %p540_p8  ;;  %s44_s25 = ssub.s32 %s479_s12, %s550_s23 }
   0xf   : > { %p45_p12 = scmp.eq.s32.totalorder %s44_s25, 0  ;;  %p54_p13 = scmp.ne.s32.totalorder %s475_s11, %s471_s10 }
  0x10   : > { %p301_p11 = pnand %p300_p10, %p61_p1  ;;  %p55_p0 = scmp.eq.s32.totalorder %s479_s12, 0 }
  0x11   : > { %s559_s26 = scalar_select %p45_p12, %s475_s11, %s47_s24  }
  0x12   : > { %303 = dma.hbm_to_vmem [thread:$0]  (!%p301_p11), %s110_s19, 128, %s112_s22, [#allocation3]  }
  0x13   : > { %p563_p3 = por %p84_p2, %p54_p13  ;;  %p313_p5 = scmp.lt.s32.totalorder %s479_s12, 2 }
  0x14   : > { %s122_s28 = sand.u32 1, %s475_s11   ;;  %s283_s29 = sshll.u32 %s479_s12, 3 }
  0x15   : > { %p56_p7 = por %p55_p0, %p54_p13  ;;  %s282_s30 = sshll.u32 %s122_s28, 3 }
  0x16   : > { %s130_s5 = scalar_lea.hbm %s636_s1, %s283_s29  ;;  %s126_s7 = scalar_lea.vmem [#allocation5], %s282_s30 }
  0x17   : > { %s132_s6 = sshll.u32 %s130_s5, 4  ;;  %s134_s8 = sshll.u32 %s126_s7, 4  ;;  %s133_s6 = int_to_ptr.hbm [resolvable:$true] %s132_s6  ;;  %s135_s8 = int_to_ptr.vmem [resolvable:$true] %s134_s8 }
  0x18   : > { %p573_p10 = pnand %p313_p5, %p56_p7  ;;  %s123_s17 = scalar_lea.sflag [#allocation6], %s122_s28 }
  0x19   : > { %s379_s18 = sshra.s32 %s133_s6, 4  ;;  %s386_s24 = scalar_lea.hbm %s636_s1, 16  ;;  %s380_s18 = int_to_ptr.hbm [resolvable:$true] %s379_s18 }
  0x1a   : > { %s381_s19 = scalar_lea.hbm %s380_s18, 8  ;;  %p383_p11 = pneg %p573_p10 }
  0x1b   : > { %p382_p2 = scmp.ne.s32.totalorder %s380_s18, %s381_s19  ;;  %p387_p0 = scmp.lt.s32.totalorder %s380_s18, %s636_s1 }
  0x1c   : > { %p388_p5 = scmp.lt.s32.totalorder %s386_s24, %s381_s19 }
  0x1d   : > { %p384_p12 = pnand %p383_p11, %p382_p2 }
  0x1e   : > { %p389_p7 = por %p388_p5, %p387_p0 }
  0x1f   : > { %p385_p13 = pneg %p384_p12 }
  0x21   : > { %p390_p9 = pnand %p389_p7, %p385_p13 }
  0x23   : > { %393 = shalt.err (!%p390_p9)
}
  0x24   : > { %307 = dma.hbm_to_vmem [thread:$0]  (!%p573_p10), %s133_s6, 128, %s135_s8, %s123_s17  }
  0x25   : > { %143 = sbr.rel (%p540_p8) target bundleno = 62 (0x3e), region = 28 }
  0x2a   : > { %454 = dma.done.wait (%p61_p1), [#allocation3], 128  }
  0x2b   : > { %456 = vsyncadd (%p61_p1), [#allocation3], 4294967168  ;;  %s594_s28 = sand.u32 1, %s471_s10  }
  0x2c   : > { %s286_s30 = sshll.u32 %s594_s28, 3  ;;  %s151_s3 = scalar_lea.sflag [#allocation6], %s594_s28 }
  0x2d   : > { %s154_s4 = scalar_lea.vmem [#allocation5], %s286_s30 }
  0x2e   : > { %458 = dma.done.wait (%p527_p4), %s151_s3, 128  }
  0x2f   : > { %460 = vsyncadd (%p527_p4), %s151_s3, 4294967168  ;;  %s289_s20 = sshll.u32 %s518_s13, 3  ;;  %s175_s8 = scalar_lea.vmem [#allocation7], %s286_s30  ;;  %v176_v0 = vld [vmem:[#allocation2] sm:$0xff]  ;;  %v177_v1 = vld [vmem:[%s154_s4] sm:$0xff] }
  0x30   : > { %s191_s7 = scalar_lea.hbm %s637_s2, %s289_s20  ;;  %s193_s14 = sshll.u32 %s175_s8, 4  ;;  %v178_v2 = vadd.f32 %v177_v1, %v176_v0  ;;  %s194_s14 = int_to_ptr.vmem [resolvable:$true] %s193_s14 }
  0x31   : > { %s195_s17 = sshll.u32 %s191_s7, 4  ;;  %s181_s18 = scalar_lea.sflag [#allocation4], %s594_s28  ;;  %s196_s17 = int_to_ptr.hbm [resolvable:$true] %s195_s17 }
  0x32   : > { %179 = vst [vmem:[%s175_s8] sm:$0xff] %v178_v2  ;;  %s423_s15 = sshra.s32 %s196_s17, 4  ;;  %s429_s22 = scalar_lea.hbm %s637_s2, 16  ;;  %s424_s15 = int_to_ptr.hbm [resolvable:$true] %s423_s15 }
  0x33   : > { %s425_s19 = scalar_lea.hbm %s424_s15, 8  ;;  %p430_p9 = scmp.lt.s32.totalorder %s424_s15, %s637_s2 }
  0x34   : > { %p426_p1 = scmp.ne.s32.totalorder %s424_s15, %s425_s19  ;;  %p431_p10 = scmp.lt.s32.totalorder %s429_s22, %s425_s19 }
  0x36   : > { %p427_p4 = pnand %p426_p1, %p563_p3  ;;  %p432_p2 = por %p431_p10, %p430_p9 }
  0x38   : > { %p428_p8 = pneg %p427_p4 }
  0x3a   : > { %p433_p11 = pnand %p432_p2, %p428_p8 }
  0x3c   : > { %436 = shalt.err (!%p433_p11)
}
  0x3d   : > { %298 = dma.vmem_to_hbm [thread:$0]  (%p563_p3), %s194_s14, 128, %s196_s17, %s181_s18  }
  0x3e PF: > { %s207_s29 = sand.u32 1, %s467_s9   ;;  %p643_p12 = scmp.ge.s32.totalorder %s479_s12, 2 }
  0x3f   : > { %s208_s28 = scalar_lea.sflag [#allocation4], %s207_s29 }
  0x40   : > { %p309_p13 = pnand %p643_p12, %p532_p6 }
  0x42   : > { %p310_p0 = pneg %p309_p13 }
  0x44   : > { %462 = dma.done.wait (%p310_p0), %s208_s28, 128  }
  0x45   : > { %464 = vsyncadd (%p310_p0), %s208_s28, 4294967168  ;;  %p16_p5 = scmp.ge.s32.totalorder %s550_s23, 4   ;;  %s644_s9 = smov %s471_s10 }
  0x46   : > { %s645_s10 = smov %s475_s11  ;;  %s646_s11 = smov %s559_s26 }
  0x47   : > { %s647_s12 = smov %s550_s23  ;;  %18 = sbr.rel (!%p16_p5) target bundleno = 6 (0x6), region = 78 }
  0x4c   :  { %214 = vsyncpa [#allocation3], 1 }
  0x4d   :  { %216 = vsyncpa [#allocation3 + $0x1], 1 }
  0x4e   :  { %217 = vsyncpa [#allocation6], 1 }
  0x4f   :  { %219 = vsyncpa [#allocation6 + $0x1], 1 }
  0x50   :  { %220 = vsyncpa [#allocation4], 1 }
  0x51   :  { %222 = vsyncpa [#allocation4 + $0x1], 1 }

// kernel: tpu_custom_call.1
= control target key start
LH: loop header
LB: loop body
LE: loop exit
PB: predicated region body
PF: predicated region fallthrough
CT: control target
= control target key end

     0   :  { %18 = vsyncpa [#allocation5], 0  ;;  %s3445_s0 = inlined_call_operand.vmem [shape: f32[2,8,32], index: 0, kind: input, shape index: {}]   ;;  %s3446_s1 = inlined_call_operand.hbm [shape: f32[1,32], index: 1, kind: input, shape index: {}]   ;;  %s3447_s2 = inlined_call_operand.vmem [shape: f32[1,32], index: 2, kind: input, shape index: {}]   ;;  %s3448_s3 = inlined_call_operand.vmem [shape: bf16[32,32], index: 3, kind: input, shape index: {}]   ;;  %s3449_s4 = inlined_call_operand.vmem [shape: f32[1,32], index: 4, kind: input, shape index: {}]   ;;  %s3450_s5 = inlined_call_operand.vmem [shape: bf16[32,64], index: 5, kind: input, shape index: {}]   ;;  %s3451_s6 = inlined_call_operand.vmem [shape: f32[1,64], index: 6, kind: input, shape index: {}]   ;;  %s3452_s7 = inlined_call_operand.vmem [shape: f32[1,32], index: 7, kind: input, shape index: {}]   ;;  %s3453_s8 = inlined_call_operand.vmem [shape: f32[1,32], index: 8, kind: input, shape index: {}]   ;;  %s3454_s9 = inlined_call_operand.hbm [shape: bf16[32,64], index: 9, kind: input, shape index: {}]   ;;  %s3455_s10 = inlined_call_operand.vmem [shape: f32[1,64], index: 10, kind: input, shape index: {}]   ;;  %s3456_s11 = inlined_call_operand.vmem [shape: bf16[64,32], index: 11, kind: input, shape index: {}]   ;;  %s3457_s12 = inlined_call_operand.vmem [shape: f32[1,32], index: 12, kind: input, shape index: {}]   ;;  %s3458_s13 = inlined_call_operand.hbm [shape: f32[2,8,32], index: 13, kind: output, shape index: {}]  }
   0x1   :  { %19 = vsyncpa [#allocation8], 0 }
   0x2   :  { %20 = vsyncpa [#allocation6], 0 }
   0x3   :  { %22 = vsyncpa [#allocation6 + $0x1], 0  ;;  %s2960_s25 = smov 0   ;;  %s2962_s26 = smov 0  }
   0x4   :  { %s2964_s27 = smov 0   ;;  %s2966_s28 = smov 0  }
   0x5   :  { %s2968_s29 = smov 0   ;;  %s2970_s30 = smov 0  }
   0x6 LB: > { %3463 = sst [smem:[#allocation13_spill]] %s2862_s27  ;;  %s2465_s14 = sadd.s32 4294967295, %s2874_s30   ;;  %s2874_s30 = sphi %s2970_s30, %s28_s30   ;;  %s2870_s29 = sphi %s2968_s29, %s3476_s29   ;;  %s2866_s28 = sphi %s2966_s28, %s3475_s28   ;;  %s2862_s27 = sphi %s2964_s27, %s3474_s27   ;;  %s2858_s26 = sphi %s2962_s26, %s3478_s26   ;;  %s2854_s25 = sphi %s2960_s25, %s3477_s25  }
   0x7   : > { %3464 = sst [smem:[#allocation14_spill]] %s2870_s29  ;;  %s2466_s15 = sadd.s32 4294967294, %s2874_s30  }
   0x8   : > { %s40_s16 = sadd.s32 1, %s2870_s29  ;;  %s327_s17 = sadd.s32 1, %s2862_s27 }
   0x9   : > { %p42_p0 = scmp.ge.s32.totalorder %s40_s16, 2  ;;  %p337_p1 = scmp.ne.s32.totalorder %s2862_s27, %s2858_s26 }
   0xa   : > { %p338_p2 = scmp.eq.s32.totalorder %s2465_s14, 1  ;;  %p343_p3 = scmp.ne.s32.totalorder %s2858_s26, %s2854_s25 }
   0xb   : > { %s3480_s16 = smov (%p42_p0, %s40_s16), 0  ;;  %p344_p5 = scmp.eq.s32.totalorder %s2466_s15, 1 }
   0xc   : > { %3465 = sst [smem:[#allocation15_spill]] %s3480_s16  ;;  %p3000_p4 = por %p338_p2, %p337_p1 }
   0xd   : > { %s322_s19 = ssub.s32 %s2870_s29, %s3480_s16  ;;  %p2467_p6 = scmp.ge.s32.totalorder %s2874_s30, 1 }
   0xe   : > { %p325_p7 = scmp.eq.s32.totalorder %s322_s19, 0  ;;  %p3007_p8 = por %p344_p5, %p343_p3 }
   0xf   : > { %p351_p9 = scmp.lt.s32.totalorder %s2874_s30, 3  ;;  %p3019_p11 = scmp.eq.s32.totalorder %s2465_s14, 0 }
  0x10   : > { %s3467_s20 = scalar_select %p3007_p8, 1, 0 }
  0x11   : > { %s3013_s21 = scalar_select %p325_p7, %s2862_s27, %s327_s17  }
  0x12   : > { %3468 = sst [smem:[#allocation16_spill]] %s3467_s20  ;;  %p3015_p10 = pnand %p2467_p6, %p351_p9 }
  0x13   : > { %3469 = sst [smem:[#allocation17_spill]] %s3013_s21  ;;  %s363_s19 = sshll.u32 %s3446_s1, 4  ;;  %s364_s19 = int_to_ptr.hbm [resolvable:$true] %s363_s19 }
  0x14   : > { %p2553_p12 = pneg %p3015_p10  ;;  %s2876_s16 = smov [#allocation4]  }
  0x15   : > { %s365_s17 = sshll.u32 %s2876_s16, 4  ;;  %s395_s27 = sshll.u32 %s3454_s9, 4  ;;  %s366_s17 = int_to_ptr.vmem [resolvable:$true] %s365_s17  ;;  %s396_s27 = int_to_ptr.hbm [resolvable:$true] %s395_s27 }
  0x16   : > { %p2554_p13 = pnand %p3019_p11, %p2553_p12  ;;  %s2877_s14 = smov [#allocation7]  }
  0x17   : > { %s397_s20 = sshll.u32 %s2877_s14, 4  ;;  %s2878_s24 = smov 64   ;;  %s398_s20 = int_to_ptr.vmem [resolvable:$true] %s397_s20 }
  0x18   : > { %2556 = dma.hbm_to_vmem [thread:$0]  (!%p2554_p13), %s364_s19, 16, %s366_s17, [#allocation5]  }
  0x19   : > { %s2879_s15 = smov 4   ;;  %429 = sbr.rel (%p3015_p10) target bundleno = 2333 (0x91d), region = 72 }
  0x1a   : > { %2559 = dma.hbm_to_vmem [thread:$0]  (!%p2554_p13), %s396_s27, 256, %s398_s20, [#allocation8], %s2878_s24, %s2878_s24, %s2879_s15  }
  0x1e   : > { %2841 = dma.done.wait (%p3019_p11), [#allocation5], 16  }
  0x1f   : > { %2843 = vsyncadd (%p3019_p11), [#allocation5], 4294967280 }
  0x20   : > { %2845 = dma.done.wait (%p3019_p11), [#allocation8], 256  }
  0x21   : > { %2847 = vsyncadd (%p3019_p11), [#allocation8], 4294967040  ;;  %p478_p0 = scmp.lt.s32.totalorder %s2866_s28, 1  ;;  %vm490_vm0 = vcmask 261120   ;;  %v2880_v4 = vmov 32.0   ;;  %v2534_v10 = vld [vmem:[%s3450_s5 + $0x8] sm:$0xff] }
  0x22   : > { %2699 = vrcp.f32 %v2880_v4  ;;  %v2536_v11 = vld [vmem:[%s3448_s3 + $0x8] sm:$0xff]  ;;  %560 = vmatpush.bf16.msra.mxu0 %v2534_v10  ;;  %v2533_v14 = vld [vmem:[%s3450_s5] sm:$0xff]  ;;  %s2881_s17 = smov 112   ;;  %s2882_s14 = smov 120   ;;  %vm578_vm8 = vcmask 1047556   ;;  %vm642_vm9 = vcmask 58368  }
  0x23   : > { %s479_s29 = scalar_select %p478_p0, %s2866_s28, 1  ;;  %808 = vmatpush.bf16.msra.mxu1 %v2536_v11  ;;  %v2535_v24 = vld [vmem:[%s3448_s3] sm:$0xff]  ;;  %vm1359_vm10 = vcmask 1043456   ;;  %vm1355_vm11 = vcmask 64512   ;;  %vm2204_vm12 = vcmask 130048   ;;  %vm2206_vm13 = vcmask 195584  }
  0x24   : > { %v2691_v43 = vld [vmem:[#allocation4] ss:$0 sm:$0xff]  ;;  %s2883_s24 = smov 104   ;;  %s2884_s15 = smov 96  }
  0x25   : > { %s2475_s27 = sshll.u32 %s479_s29, 3  ;;  %v2692_v46 = vld [vmem:[%s3447_s2] ss:$0 sm:$0xff]  ;;  %s2887_s29 = smov 16  }
  0x26   : > { %s3048_s21 = scalar_lea.vmem %s3445_s0, %s2475_s27  ;;  %561 = vmatpush.bf16.msra.mxu0 %v2533_v14  ;;  %v2693_v55 = vld [vmem:[%s3451_s6] ss:$0 sm:$0xff]  ;;  %s2888_s27 = smov 24  }
  0x27   : > { %v3051_v0 = vld [vmem:[%s3048_s21] sm:$0xff]  ;;  %809 = vmatpush.bf16.msra.mxu1 %v2535_v24  ;;  %s2889_s16 = smov 8   ;;  %s475_s22 = sand.u32 1, %s2858_s26  }
  0x28   : > { %v491_v1 = vsel %vm490_vm0, %v3051_v0, 0.0  ;;  %v494_v2 = vmul.f32 %v3051_v0, %v3051_v0  ;;  %v2700_v5 = vpop.eup %2699  ;;  %v2694_v56 = vld [vmem:[%s3449_s4] ss:$0 sm:$0xff]  ;;  %s2474_s23 = sshll.u32 %s475_s22, 3  ;;  %s2530_s19 = sshll.u32 %s2866_s28, 3 }
  0x29   : > { %492 = vadd.xlane.f32.xlu0 %v491_v1  ;;  %740 = vadd.xlane.f32.xlu1 %v491_v1  ;;  %v499_v6 = vmul.f32 32.0, %v2700_v5  ;;  %vm503_vm1 = vweird.f32 %v2700_v5  ;;  %v2885_v1 = vmov 1983009808   ;;  %s2357_s28 = scalar_lea.sflag [#allocation6], %s475_s22 }
  0x2a   : > { %v495_v3 = vsel %vm490_vm0, %v494_v2, 0.0  ;;  %v583_v2 = vunpack.c.l.s4 %v2885_v1 }
  0x2b   : > { %v500_v7 = vsub.f32 1.0, %v499_v6 }
  0x2c   : > { %v3098_v6 = vunpack.c.0.s8 %v583_v2 }
  0x2d   : > { %v501_v8 = vmul.f32 %v2700_v5, %v500_v7 }
  0x2f   : > { %v502_v9 = vadd.f32 %v2700_v5, %v501_v8 }
  0x31   : > { %496 = vadd.xlane.f32.xlu0 %v495_v3  ;;  %744 = vadd.xlane.f32.xlu1 %v495_v3  ;;  %v3067_v15 = vsel %vm503_vm1, %v2700_v5, %v502_v9  ;;  %v2886_v9 = vmov 1934713408  }
  0x32   : > { %v607_v10 = vunpack.c.l.s4 %v2886_v9 }
  0x9c   : > { %v493_v12 = vpop.xlane.xlu0 %492  ;;  %v741_v13 = vpop.xlane.xlu1 %740 }
  0x9d   : > { %v753_v16 = vmul.f32 %v741_v13, %v3067_v15  ;;  %v505_v17 = vmul.f32 %v3067_v15, %v493_v12 }
  0x9f   : > { %v755_v18 = vmul.f32 %v753_v16, %v753_v16  ;;  %v507_v21 = vmul.f32 %v505_v17, %v505_v17  ;;  %v757_v39 = vsub.f32 %v3051_v0, %v753_v16  ;;  %v509_v41 = vsub.f32 %v3051_v0, %v505_v17 }
  0xa0   : > { %v3107_v16 = vunpack.c.0.s8 %v607_v10 }
  0xa4   : > { %v497_v19 = vpop.xlane.xlu0 %496  ;;  %v745_v20 = vpop.xlane.xlu1 %744 }
  0xa5   : > { %v506_v22 = vmul.f32 %v3067_v15, %v497_v19  ;;  %v754_v23 = vmul.f32 %v745_v20, %v3067_v15 }
  0xa7   : > { %v508_v25 = vsub.f32 %v506_v22, %v507_v21  ;;  %v756_v26 = vsub.f32 %v754_v23, %v755_v18 }
  0xa9   : > { %v510_v27 = vadd.f32 1e-05, %v508_v25  ;;  %v758_v28 = vadd.f32 1e-05, %v756_v26 }
  0xab   : > { %2701 = vrsqrt.f32 %v510_v27  ;;  %vm765_vm2 = vweird.f32 %v758_v28  ;;  %vm517_vm5 = vweird.f32 %v510_v27 }
  0xac   : > { %2703 = vrsqrt.f32 %v758_v28 }
  0xb1   : > { %v2702_v29 = vpop.eup %2701 }
  0xb2   : > { %v2704_v30 = vpop.eup %2703  ;;  %v512_v31 = vmul.f32 %v2702_v29, %v510_v27  ;;  %vm518_vm4 = vweird.f32 %v2702_v29 }
  0xb3   : > { %v760_v32 = vmul.f32 %v2704_v30, %v758_v28  ;;  %vm766_vm3 = vweird.f32 %v2704_v30  ;;  %vm519_vm7 = vmor %vm517_vm5, %vm518_vm4 }
  0xb4   : > { %v513_v33 = vmul.f32 %v2702_v29, %v512_v31  ;;  %vm767_vm6 = vmor %vm765_vm2, %vm766_vm3 }
  0xb5   : > { %v761_v34 = vmul.f32 %v2704_v30, %v760_v32 }
  0xb6   : > { %v514_v35 = vmul.f32 0.5, %v513_v33 }
  0xb7   : > { %v762_v36 = vmul.f32 0.5, %v761_v34 }
  0xb8   : > { %v515_v37 = vsub.f32 1.5, %v514_v35 }
  0xb9   : > { %v763_v38 = vsub.f32 1.5, %v762_v36 }
  0xba   : > { %v516_v40 = vmul.f32 %v2702_v29, %v515_v37 }
  0xbb   : > { %v764_v42 = vmul.f32 %v2704_v30, %v763_v38 }
  0xbc   : > { %v520_v44 = vsel %vm519_vm7, %v2702_v29, %v516_v40 }
  0xbd   : > { %v521_v45 = vmul.f32 %v520_v44, %v509_v41  ;;  %v768_v47 = vsel %vm767_vm6, %v2704_v30, %v764_v42  ;;  %vm2337_vm6 = vcmask 523264  }
  0xbe   : > { %v769_v48 = vmul.f32 %v768_v47, %v757_v39 }
  0xbf   : > { %v525_v49 = vmul.f32 %v2691_v43, %v521_v45 }
  0xc0   : > { %v773_v50 = vmul.f32 %v2691_v43, %v769_v48 }
  0xc1   : > { %v529_v51 = vadd.f32 %v2692_v46, %v525_v49 }
  0xc2   : > { %v777_v52 = vadd.f32 %v2692_v46, %v773_v50 }
  0xc3   : > { %v530_v53 = vpack.c.bf16 %v529_v51, %v529_v51 }
  0xc4   : > { %v778_v54 = vpack.c.bf16 %v777_v52, %v777_v52 }
  0xc5   : > { %2484 = vmatmul.msk.bf16.vlgmr.msra.gmra.mxu0 %vm490_vm0, %v530_v53 }
  0xc6   : > { %2493 = vmatmul.msk.bf16.vlgmr.msra.gmra.mxu1 %vm490_vm0, %v778_v54 }
 0x142   : > { %v563_v57 = vpop.f32.mrf.mxu0 }
 0x143   : > { %v564_v58 = vadd.f32 %v2693_v55, %v563_v57  ;;  %v811_v59 = vpop.f32.mrf.mxu1 }
 0x144   : > { %v3089_v60 = vadd.f32 %v2694_v56, %v811_v59 }
 0x145   : > { %571 = vrot.lane.b32.xlu0 %v564_v58, %s2881_s17  ;;  %568 = vrot.lane.b32.xlu2 %v564_v58, %s2882_s14  ;;  %v580_v12 = vrot.slane %v564_v58, 4 }
 0x146   : > { %822 = vrot.lane.b32.xlu1 %v3089_v60, %s2883_s24 }
 0x14a   : > { %v565_v61 = vpop.f32.mrf.mxu0 }
 0x14b   : > { %v813_v62 = vpop.f32.mrf.mxu1 }
 0x14d   : > { %816 = vrot.lane.b32.xlu0 %v3089_v60, %s2882_s14  ;;  %574 = vrot.lane.b32.xlu2 %v564_v58, %s2883_s24 }
 0x155   : > { %819 = vrot.lane.b32.xlu2 %v3089_v60, %s2881_s17 }
 0x19f   : > { %v569_v63 = vpop.permute.xlu2 %568 }
 0x1a0   : > { %v2633_v0 = vpack.i.bf16 %v564_v58, %v569_v63  ;;  %v592_v4 = vrot.slane %v569_v63, 4 }
 0x1a2   : > { %2634 = vrot.lane.b32.xlu0 %v2633_v0, %s2884_s15 }
 0x1a7   : > { %v3095_v3 = vpop.permute.xlu2 %574 }
 0x1a8   : > { %v590_v5 = vrot.slane %v3095_v3, 4  ;;  %v593_v7 = vsel %vm578_vm8, %v3095_v3, %v592_v4 }
 0x1a9   : > { %v601_v11 = vperm.slane %v593_v7, %v3098_v6 }
 0x1aa   : > { %v591_v8 = vsel %vm578_vm8, %v590_v5, %v569_v63 }
 0x1ab   : > { %v597_v13 = vperm.slane %v591_v8, %v3098_v6  ;;  %v614_v20 = vrot.slane %v601_v11, 4 }
 0x1ad   : > { %v602_v23 = vrot.slane %v597_v13, 4 }
 0x1af   : > { %v3137_v59 = vpop.permute.xlu2 %819 }
 0x1b7   : > { %v3105_v14 = vpop.permute.xlu0 %571 }
 0x1b8   : > { %v577_v17 = vrot.slane %v3105_v14, 4  ;;  %v2662_v18 = vpack.i.bf16 %v3105_v14, %v3095_v3  ;;  %v581_v19 = vsel %vm578_vm8, %v3105_v14, %v580_v12  ;;  %v3141_v63 = vpop.permute.xlu1 %822 }
 0x1b9   : > { %v589_v21 = vperm.slane %v581_v19, %v3098_v6 }
 0x1ba   : > { %v579_v22 = vsel %vm578_vm8, %v577_v17, %v564_v58 }
 0x1bb   : > { %v585_v24 = vperm.slane %v579_v22, %v3098_v6  ;;  %v615_v25 = vsel %vm578_vm8, %v614_v20, %v589_v21  ;;  %v616_v26 = vrot.slane %v589_v21, 4 }
 0x1bc   : > { %v621_v27 = vperm.slane %v615_v25, %v3107_v16 }
 0x1bd   : > { %v603_v28 = vsel %vm578_vm8, %v602_v23, %v585_v24  ;;  %v604_v29 = vrot.slane %v585_v24, 4  ;;  %v617_v30 = vsel %vm578_vm8, %v601_v11, %v616_v26 }
 0x1be   : > { %v609_v31 = vperm.slane %v603_v28, %v3107_v16  ;;  %v625_v32 = vperm.slane %v617_v30, %v3107_v16  ;;  %v630_v33 = vrot.slane %v621_v27, 4  ;;  %v638_v34 = vpack.c.bf16 %v621_v27, %v621_v27 }
 0x1bf   : > { %v605_v35 = vsel %vm578_vm8, %v597_v13, %v604_v29  ;;  %v3139_v61 = vpop.permute.xlu0 %816 }
 0x1c0   : > { %v613_v36 = vperm.slane %v605_v35, %v3107_v16  ;;  %v626_v37 = vrot.slane %v609_v31, 4  ;;  %v634_v38 = vpack.c.bf16 %v609_v31, %v609_v31  ;;  %v631_v39 = vsel %vm578_vm8, 0.0, %v630_v33  ;;  %647 = vst.msk [vmem:[#allocation2 + $0x8] sm:$0x3] %vm642_vm9, %v638_v34 }
 0x1c1   : > { %v632_v40 = vrot.slane %v625_v32, 4  ;;  %v639_v41 = vpack.c.bf16 %v631_v39, %v631_v39  ;;  %v640_v45 = vpack.c.bf16 %v625_v32, %v625_v32 }
 0x1c2   : > { %v627_v42 = vsel %vm578_vm8, 0.0, %v626_v37  ;;  %v628_v43 = vrot.slane %v613_v36, 4  ;;  %v636_v44 = vpack.c.bf16 %v613_v36, %v613_v36  ;;  %643 = vst.msk [vmem:[#allocation2] sm:$0x3] %vm642_vm9, %v634_v38 }
 0x1c3   : > { %v635_v46 = vpack.c.bf16 %v627_v42, %v627_v42  ;;  %v633_v47 = vsel %vm578_vm8, 0.0, %v632_v40  ;;  %648 = vst.msk [vmem:[#allocation2 + $0xa] sm:$0x3] %vm642_vm9, %v639_v41 }
 0x1c4   : > { %v629_v48 = vsel %vm578_vm8, 0.0, %v628_v43  ;;  %645 = vst.msk [vmem:[#allocation2 + $0x4] sm:$0x3] %vm642_vm9, %v636_v44  ;;  %v641_v49 = vpack.c.bf16 %v633_v47, %v633_v47 }
 0x1c5   : > { %v637_v50 = vpack.c.bf16 %v629_v48, %v629_v48  ;;  %644 = vst.msk [vmem:[#allocation2 + $0x2] sm:$0x3] %vm642_vm9, %v635_v46 }
 0x1c6   : > { %649 = vst.msk [vmem:[#allocation2 + $0xc] sm:$0x3] %vm642_vm9, %v640_v45 }
 0x1c7   : > { %646 = vst.msk [vmem:[#allocation2 + $0x6] sm:$0x3] %vm642_vm9, %v637_v50  ;;  %v894_v51 = vld [vmem:[#allocation2 + $0x8] sm:$0x3] }
 0x1c8   : > { %650 = vst.msk [vmem:[#allocation2 + $0xe] sm:$0x3] %vm642_vm9, %v641_v49 }
 0x1c9   : > { %v890_v53 = vld [vmem:[#allocation2] sm:$0x3] }
 0x1ca   : > { %v895_v52 = vld [vmem:[#allocation2 + $0xa] sm:$0x3] }
 0x1cb   : > { %2641 = vxpose.binary.xlu1.c.b16.start.end [1/2] (short) (narrow) %v895_v52, %v894_v51, 16  ;;  %v892_v57 = vld [vmem:[#allocation2 + $0x4] sm:$0x3] }
 0x1cc   : > { %v891_v54 = vld [vmem:[#allocation2 + $0x2] sm:$0x3] }
 0x1cd   : > { %2644 = vxpose.binary.xlu2.c.b16.start.end [1/2] (short) (narrow) %v891_v54, %v890_v53, 16  ;;  %v896_v55 = vld [vmem:[#allocation2 + $0xc] sm:$0x3] }
 0x1ce   : > { %v893_v58 = vld [vmem:[#allocation2 + $0x6] sm:$0x3] }
 0x1cf   : > { %v897_v56 = vld [vmem:[#allocation2 + $0xe] sm:$0x3] }
 0x1d0   : > { %2638 = vxpose.binary.xlu0.c.b16.start.end [1/2] (short) (narrow) %v897_v56, %v896_v55, 16 }
 0x1dd   : > { %2647 = vxpose.binary.xlu2.c.b16.start.end [1/2] (short) (narrow) %v893_v58, %v892_v57, 16 }
 0x214   : > { %v3143_v0 = vpop.permute.xlu0 %2634 }
 0x26e   : > { %v2645_v62 = vpop.trf.xlu2 }
 0x276   : > { %v2646_v1 = vpop.trf.xlu2 }
 0x277   : > { %v2642_v2 = vpop.trf.xlu1 }
 0x278   : > { %v1087_v4 = vrot.slane %v2642_v2, 4 }
 0x27a   : > { %v1088_v5 = vsel %vm578_vm8, %v1087_v4, %v2645_v62  ;;  %v828_v4 = vrot.slane %v3089_v60, 4 }
 0x27b   : > { %v1092_v7 = vperm.slane %v1088_v5, %v3098_v6  ;;  %v840_v5 = vrot.slane %v3139_v61, 4 }
 0x27c   : > { %v2639_v8 = vpop.trf.xlu0 }
 0x27d   : > { %v1093_v9 = vrot.slane %v2639_v8, 4  ;;  %v1101_v13 = vrot.slane %v1092_v7, 4  ;;  %v825_v8 = vrot.slane %v3137_v59, 4 }
 0x27e   : > { %v2648_v10 = vpop.trf.xlu2 }
 0x27f   : > { %v1094_v11 = vsel %vm578_vm8, %v1093_v9, %v2648_v10  ;;  %v2643_v12 = vpop.trf.xlu1  ;;  %v841_v9 = vsel %vm578_vm8, %v3141_v63, %v840_v5  ;;  %v827_v3 = vsel %vm578_vm8, %v825_v8, %v3089_v60 }
 0x280   : > { %v1098_v17 = vperm.slane %v1094_v11, %v3098_v6  ;;  %v1115_v19 = vrot.slane %v2643_v12, 4  ;;  %v838_v11 = vrot.slane %v3141_v63, 4  ;;  %v849_v12 = vperm.slane %v841_v9, %v3098_v6 }
 0x282   : > { %v1102_v20 = vsel %vm578_vm8, %v1098_v17, %v1101_v13  ;;  %v1116_v21 = vsel %vm578_vm8, %v1115_v19, %v2646_v1  ;;  %v1099_v22 = vrot.slane %v1098_v17, 4  ;;  %v833_v13 = vperm.slane %v827_v3, %v3098_v6 }
 0x283   : > { %v1120_v23 = vperm.slane %v1116_v21, %v3098_v6  ;;  %v1110_v25 = vperm.slane %v1102_v20, %v3107_v16  ;;  %v862_v17 = vrot.slane %v849_v12, 4 }
 0x284   : > { %v2640_v24 = vpop.trf.xlu0  ;;  %v1100_v28 = vsel %vm578_vm8, %v1099_v22, %v1092_v7  ;;  %v829_v7 = vsel %vm578_vm8, %v3137_v59, %v828_v4  ;;  %v852_v21 = vrot.slane %v833_v13, 4 }
 0x285   : > { %v1121_v26 = vrot.slane %v2640_v24, 4  ;;  %v1129_v30 = vrot.slane %v1120_v23, 4  ;;  %v1113_v32 = vrot.slane %v1110_v25, 4  ;;  %v1106_v35 = vperm.slane %v1100_v28, %v3107_v16 }
 0x286   : > { %v2649_v27 = vpop.trf.xlu2  ;;  %v1163_v38 = vshrl.u32 %v1110_v25, 16  ;;  %v837_v10 = vperm.slane %v829_v7, %v3098_v6 }
 0x287   : > { %v1122_v29 = vsel %vm578_vm8, %v1121_v26, %v2649_v27  ;;  %v1114_v41 = vsel %vm578_vm8, 0, %v1113_v32  ;;  %v1147_v43 = vshrl.u32 %v1106_v35, 16  ;;  %v1111_v55 = vrot.slane %v1106_v35, 4 }
 0x288   : > { %v1126_v31 = vperm.slane %v1122_v29, %v3098_v6  ;;  %v1171_v48 = vshrl.u32 %v1114_v41, 16  ;;  %v864_v14 = vrot.slane %v837_v10, 4  ;;  %v863_v63 = vsel %vm578_vm8, %v862_v17, %v837_v10 }
 0x289   : > { %v1112_v57 = vsel %vm578_vm8, 0, %v1111_v55  ;;  %v869_v24 = vperm.slane %v863_v63, %v3107_v16 }
 0x28a   : > { %v1127_v33 = vrot.slane %v1126_v31, 4  ;;  %v1130_v34 = vsel %vm578_vm8, %v1126_v31, %v1129_v30  ;;  %v1155_v62 = vshrl.u32 %v1112_v57, 16  ;;  %v865_v59 = vsel %vm578_vm8, %v849_v12, %v864_v14 }
 0x28b   : > { %v1138_v36 = vperm.slane %v1130_v34, %v3107_v16  ;;  %v873_v20 = vperm.slane %v865_v59, %v3107_v16  ;;  %v878_v27 = vrot.slane %v869_v24, 4 }
 0x28c   : > { %v1128_v37 = vsel %vm578_vm8, %v1127_v33, %v1120_v23 }
 0x28d   : > { %v1164_v39 = vshrl.u32 %v1138_v36, 16  ;;  %v1134_v40 = vperm.slane %v1128_v37, %v3107_v16  ;;  %v1141_v42 = vrot.slane %v1138_v36, 4  ;;  %v1161_v44 = vpack.i.b16 %v1138_v36, %v1110_v25 }
 0x28e   : > { %v880_v25 = vrot.slane %v873_v20, 4  ;;  %v879_v34 = vsel %vm578_vm8, 0.0, %v878_v27 }
 0x28f   : > { %v1165_v45 = vpack.i.b16 %v1164_v39, %v1163_v38  ;;  %v1148_v46 = vshrl.u32 %v1134_v40, 16  ;;  %v1142_v47 = vsel %vm578_vm8, 0, %v1141_v42  ;;  %v1145_v50 = vpack.i.b16 %v1134_v40, %v1106_v35 }
 0x290   : > { %v1172_v49 = vshrl.u32 %v1142_v47, 16  ;;  %v1169_v52 = vpack.i.b16 %v1142_v47, %v1114_v41  ;;  %v1139_v54 = vrot.slane %v1134_v40, 4  ;;  %v881_v28 = vsel %vm578_vm8, 0.0, %v880_v25 }
 0x291   : > { %2653 = vxpose.binary.xlu0.c.b16.start.end [1/2] (short) (narrow) %v1165_v45, %v1161_v44, 16  ;;  %v1149_v51 = vpack.i.b16 %v1148_v46, %v1147_v43  ;;  %v889_v32 = vpack.c.bf16 %v881_v28, %v881_v28  ;;  %v888_v35 = vpack.c.bf16 %v873_v20, %v873_v20 }
 0x292   : > { %v1173_v53 = vpack.i.b16 %v1172_v49, %v1171_v48  ;;  %v1140_v56 = vsel %vm578_vm8, 0, %v1139_v54  ;;  %v886_v38 = vpack.c.bf16 %v869_v24, %v869_v24  ;;  %v887_v40 = vpack.c.bf16 %v879_v34, %v879_v34 }
 0x293   : > { %2650 = vxpose.binary.xlu2.c.b16.start.end [1/2] (short) (narrow) %v1149_v51, %v1145_v50, 16  ;;  %v1156_v58 = vshrl.u32 %v1140_v56, 16  ;;  %v1153_v1 = vpack.i.b16 %v1140_v56, %v1112_v57  ;;  %v933_v41 = vrot.slane %v889_v32, 4  ;;  %v913_v44 = vrot.slane %v888_v35, 4 }
 0x294   : > { %2659 = vxpose.binary.xlu1.c.b16.start.end [1/2] (short) (narrow) %v1173_v53, %v1169_v52, 16  ;;  %v906_v48 = vrot.slane %v886_v38, 4  ;;  %v927_v52 = vrot.slane %v887_v40, 4 }
 0x295   : > { %v1157_v2 = vpack.i.b16 %v1156_v58, %v1155_v62 }
 0x2a3   : > { %2656 = vxpose.binary.xlu2.c.b16.start.end [1/2] (short) (narrow) %v1157_v2, %v1153_v1, 16 }
 0x2ee   : > { %2663 = vrot.lane.b32.xlu1 %v2662_v18, %s2884_s15  ;;  %v839_v18 = vsel %vm578_vm8, %v838_v11, %v3139_v61 }
 0x2ef   : > { %v845_v19 = vperm.slane %v839_v18, %v3098_v6 }
 0x2f1   : > { %v850_v23 = vrot.slane %v845_v19, 4  ;;  %v853_v60 = vsel %vm578_vm8, %v845_v19, %v852_v21 }
 0x2f2   : > { %v861_v61 = vperm.slane %v853_v60, %v3107_v16 }
 0x2f3   : > { %v851_v26 = vsel %vm578_vm8, %v850_v23, %v833_v13 }
 0x2f4   : > { %v857_v29 = vperm.slane %v851_v26, %v3107_v16  ;;  %v876_v30 = vrot.slane %v861_v61, 4  ;;  %v884_v47 = vpack.c.bf16 %v861_v61, %v861_v61 }
 0x2f6   : > { %v874_v36 = vrot.slane %v857_v29, 4  ;;  %v877_v37 = vsel %vm578_vm8, 0.0, %v876_v30  ;;  %v882_v54 = vpack.c.bf16 %v857_v29, %v857_v29  ;;  %v914_v55 = vsel %vm578_vm8, %v913_v44, %v884_v47 }
 0x2f7   : > { %v885_v45 = vpack.c.bf16 %v877_v37, %v877_v37  ;;  %v918_v9 = vperm.slane %v914_v55, %v3098_v6  ;;  %v2636_v47 = vunpack.i.l.bf16 %v3143_v0 }
 0x2f8   : > { %v875_v46 = vsel %vm578_vm8, 0.0, %v874_v36  ;;  %v908_v4 = vsel %vm578_vm8, %v906_v48, %v882_v54 }
 0x2f9   : > { %v934_v53 = vsel %vm578_vm8, %v933_v41, %v885_v45  ;;  %v883_v58 = vpack.c.bf16 %v875_v46, %v875_v46  ;;  %v912_v3 = vperm.slane %v908_v4, %v3098_v6  ;;  %v919_v19 = vrot.slane %v918_v9, 4 }
 0x2fa   : > { %v938_v5 = vperm.slane %v934_v53, %v3098_v6  ;;  %v2637_v46 = vunpack.i.h.bf16 %v3143_v0 }
 0x2fb   : > { %v928_v10 = vsel %vm578_vm8, %v927_v52, %v883_v58  ;;  %v920_v23 = vsel %vm578_vm8, %v919_v19, %v912_v3  ;;  %v677_v52 = vrot.slane %v2636_v47, 4 }
 0x2fc   : > { %v932_v14 = vperm.slane %v928_v10, %v3098_v6  ;;  %v939_v18 = vrot.slane %v938_v5, 4  ;;  %v924_v27 = vperm.slane %v920_v23, %v3107_v16 }
 0x2fe   : > { %v950_v41 = vshrl.u32 %v924_v27, 16 }
 0x334   : > { %v2651_v22 = vpop.trf.xlu2 }
 0x33c   : > { %v2652_v31 = vpop.trf.xlu2 }
 0x33d   : > { %v2654_v33 = vpop.trf.xlu0 }
 0x33e   : > { %v1303_v42 = vrot.slane %v2654_v33, 4 }
 0x340   : > { %v2660_v39 = vpop.trf.xlu1  ;;  %v1304_v50 = vsel %vm578_vm8, %v1303_v42, %v2651_v22  ;;  %v940_v22 = vsel %vm578_vm8, %v939_v18, %v932_v14 }
 0x341   : > { %v1309_v43 = vrot.slane %v2660_v39, 4  ;;  %v1308_v62 = vperm.slane %v1304_v50, %v3098_v6  ;;  %v944_v61 = vperm.slane %v940_v22, %v3107_v16  ;;  %v925_v50 = vrot.slane %v924_v27, 4 }
 0x343   : > { %v951_v35 = vshrl.u32 %v944_v61, 16  ;;  %v949_v40 = vpack.i.b16 %v944_v61, %v924_v27  ;;  %v945_v48 = vrot.slane %v944_v61, 4 }
 0x344   : > { %v2657_v49 = vpop.trf.xlu2 }
 0x345   : > { %v1310_v51 = vsel %vm578_vm8, %v1309_v43, %v2657_v49  ;;  %v2655_v57 = vpop.trf.xlu0  ;;  %v952_v44 = vpack.i.b16 %v951_v35, %v950_v41  ;;  %v946_v55 = vsel %vm578_vm8, 0, %v945_v48 }
 0x346   : > { %v1314_v56 = vperm.slane %v1310_v51, %v3098_v6  ;;  %v1323_v7 = vrot.slane %v2655_v57, 4  ;;  %v665_v51 = vrot.slane %v2637_v46, 4 }
 0x348   : > { %v1315_v1 = vrot.slane %v1314_v56, 4  ;;  %v2661_v2 = vpop.trf.xlu1  ;;  %v1324_v13 = vsel %vm578_vm8, %v1323_v7, %v2652_v31  ;;  %v957_v7 = vshrl.u32 %v946_v55, 16 }
 0x349   : > { %v1329_v8 = vrot.slane %v2661_v2, 4  ;;  %v1328_v21 = vperm.slane %v1324_v13, %v3098_v6  ;;  %v926_v2 = vsel %vm578_vm8, 0, %v925_v50 }
 0x34a   : > { %v1316_v11 = vsel %vm578_vm8, %v1315_v1, %v1308_v62  ;;  %v955_v19 = vpack.i.b16 %v946_v55, %v926_v2 }
 0x34b   : > { %v1320_v59 = vperm.slane %v1316_v11, %v3107_v16 }
 0x34c   : > { %v2658_v12 = vpop.trf.xlu2 }
 0x34d   : > { %v1330_v17 = vsel %vm578_vm8, %v1329_v8, %v2658_v12  ;;  %v1321_v60 = vrot.slane %v1320_v59, 4  ;;  %v1346_v26 = vshrl.u32 %v1320_v59, 16  ;;  %v956_v12 = vshrl.u32 %v926_v2, 16 }
 0x34e   : > { %v1334_v20 = vperm.slane %v1330_v17, %v3098_v6 }
 0x34f   : > { %v1322_v30 = vsel %vm578_vm8, 0, %v1321_v60 }
 0x350   : > { %v1335_v63 = vrot.slane %v1334_v20, 4  ;;  %v1352_v37 = vshrl.u32 %v1322_v30, 16 }
 0x352   : > { %v1336_v24 = vsel %vm578_vm8, %v1335_v63, %v1328_v21  ;;  %v958_v63 = vpack.i.b16 %v957_v7, %v956_v12 }
 0x353   : > { %v1340_v25 = vperm.slane %v1336_v24, %v3107_v16 }
 0x355   : > { %v1345_v28 = vpack.i.b16 %v1340_v25, %v1320_v59  ;;  %v1347_v29 = vshrl.u32 %v1340_v25, 16  ;;  %v1341_v31 = vrot.slane %v1340_v25, 4 }
 0x357   : > { %v1361_v32 = vsel %vm1359_vm10, %v1345_v28, 0  ;;  %v1348_v33 = vpack.i.b16 %v1347_v29, %v1346_v26  ;;  %v1342_v34 = vsel %vm578_vm8, 0, %v1341_v31 }
 0x358   : > { %1370 = vmatpush.bf16.msra.mxu2 %v1361_v32  ;;  %v1351_v36 = vpack.i.b16 %v1342_v34, %v1322_v30  ;;  %v1353_v38 = vshrl.u32 %v1342_v34, 16 }
 0x359   : > { %v1380_v39 = vsel %vm1359_vm10, %v1348_v33, 0 }
 0x35a   : > { %1389 = vmatpush.bf16.msra.mxu3 %v1380_v39  ;;  %v1399_v42 = vsel %vm1359_vm10, %v1351_v36, 0  ;;  %v1354_v43 = vpack.i.b16 %v1353_v38, %v1352_v37 }
 0x35b   : > { %2494 = vmatmul.msk.bf16.vlgmr.msra.gmra.mxu2 %vm1355_vm11, %v949_v40 }
 0x35c   : > { %1408 = vmatpush.bf16.msrb.mxu2 %v1399_v42  ;;  %v1418_v45 = vsel %vm1359_vm10, %v1354_v43, 0 }
 0x35d   : > { %2495 = vmatmul.msk.bf16.vlgmr.msra.gmra.mxu3 %vm1355_vm11, %v952_v44 }
 0x35e   : > { %1427 = vmatpush.bf16.msrb.mxu3 %v1418_v45 }
 0x360   : > { %v2664_v49 = vpop.permute.xlu1 %2663 }
 0x361   : > { %v2666_v53 = vunpack.i.h.bf16 %v2664_v49  ;;  %v2665_v54 = vunpack.i.l.bf16 %v2664_v49 }
 0x363   : > { %v663_v56 = vrot.slane %v2666_v53, 4  ;;  %v666_v57 = vsel %vm578_vm8, %v2666_v53, %v665_v51  ;;  %v675_v58 = vrot.slane %v2665_v54, 4  ;;  %v678_v62 = vsel %vm578_vm8, %v2665_v54, %v677_v52 }
 0x364   : > { %v674_v0 = vperm.slane %v666_v57, %v3098_v6  ;;  %v686_v1 = vperm.slane %v678_v62, %v3098_v6 }
 0x365   : > { %v664_v4 = vsel %vm578_vm8, %v663_v56, %v2637_v46  ;;  %v676_v5 = vsel %vm578_vm8, %v675_v58, %v2636_v47 }
 0x366   : > { %v670_v8 = vperm.slane %v664_v4, %v3098_v6  ;;  %v701_v9 = vrot.slane %v674_v0, 4  ;;  %v682_v10 = vperm.slane %v676_v5, %v3098_v6  ;;  %v699_v11 = vrot.slane %v686_v1, 4 }
 0x368   : > { %v689_v3 = vrot.slane %v670_v8, 4  ;;  %v687_v14 = vrot.slane %v682_v10, 4  ;;  %v700_v18 = vsel %vm578_vm8, %v699_v11, %v674_v0  ;;  %v702_v13 = vsel %vm578_vm8, %v686_v1, %v701_v9 }
 0x369   : > { %v706_v17 = vperm.slane %v700_v18, %v3107_v16  ;;  %v710_v59 = vperm.slane %v702_v13, %v3107_v16 }
 0x36a   : > { %v688_v20 = vsel %vm578_vm8, %v687_v14, %v670_v8  ;;  %v690_v21 = vsel %vm578_vm8, %v682_v10, %v689_v3 }
 0x36b   : > { %v694_v22 = vperm.slane %v688_v20, %v3107_v16  ;;  %v698_v23 = vperm.slane %v690_v21, %v3107_v16  ;;  %v715_v60 = vrot.slane %v706_v17, 4  ;;  %v717_v24 = vrot.slane %v710_v59, 4  ;;  %2496 = vmatmul.msk.bf16.vlgmr.msrb.gmra.mxu2 %vm1355_vm11, %v955_v19 }
 0x36c   : > { %v723_v25 = vpack.c.bf16 %v706_v17, %v706_v17  ;;  %v725_v61 = vpack.c.bf16 %v710_v59, %v710_v59 }
 0x36d   : > { %v711_v26 = vrot.slane %v694_v22, 4  ;;  %v713_v27 = vrot.slane %v698_v23, 4  ;;  %v716_v28 = vsel %vm578_vm8, 0.0, %v715_v60  ;;  %2497 = vmatmul.msk.bf16.vlgmr.msrb.gmra.mxu3 %vm1355_vm11, %v958_v63  ;;  %v718_v29 = vsel %vm578_vm8, 0.0, %v717_v24 }
 0x36e   : > { %v719_v30 = vpack.c.bf16 %v694_v22, %v694_v22  ;;  %v721_v31 = vpack.c.bf16 %v698_v23, %v698_v23  ;;  %731 = vst.msk [vmem:[#allocation3 + $0x8] sm:$0x3] %vm642_vm9, %v723_v25  ;;  %v724_v36 = vpack.c.bf16 %v716_v28, %v716_v28  ;;  %v726_v37 = vpack.c.bf16 %v718_v29, %v718_v29 }
 0x36f   : > { %v712_v32 = vsel %vm578_vm8, 0.0, %v711_v26  ;;  %v714_v33 = vsel %vm578_vm8, 0.0, %v713_v27  ;;  %733 = vst.msk [vmem:[#allocation3 + $0xc] sm:$0x3] %vm642_vm9, %v725_v61 }
 0x370   : > { %v720_v34 = vpack.c.bf16 %v712_v32, %v712_v32  ;;  %v722_v35 = vpack.c.bf16 %v714_v33, %v714_v33  ;;  %727 = vst.msk [vmem:[#allocation3] sm:$0x3] %vm642_vm9, %v719_v30 }
 0x371   : > { %729 = vst.msk [vmem:[#allocation3 + $0x4] sm:$0x3] %vm642_vm9, %v721_v31 }
 0x372   : > { %728 = vst.msk [vmem:[#allocation3 + $0x2] sm:$0x3] %vm642_vm9, %v720_v34 }
 0x373   : > { %730 = vst.msk [vmem:[#allocation3 + $0x6] sm:$0x3] %vm642_vm9, %v722_v35 }
 0x374   : > { %732 = vst.msk [vmem:[#allocation3 + $0xa] sm:$0x3] %vm642_vm9, %v724_v36 }
 0x375   : > { %734 = vst.msk [vmem:[#allocation3 + $0xe] sm:$0x3] %vm642_vm9, %v726_v37  ;;  %v902_v40 = vld [vmem:[#allocation3 + $0x8] sm:$0x3] }
 0x376   : > { %v904_v54 = vld [vmem:[#allocation3 + $0xc] sm:$0x3] }
 0x377   : > { %v898_v38 = vld [vmem:[#allocation3] sm:$0x3] }
 0x378   : > { %v900_v56 = vld [vmem:[#allocation3 + $0x4] sm:$0x3] }
 0x379   : > { %v899_v39 = vld [vmem:[#allocation3 + $0x2] sm:$0x3] }
 0x37a   : > { %2670 = vxpose.binary.xlu2.c.b16.start.end [1/2] (short) (narrow) %v899_v39, %v898_v38, 16  ;;  %v901_v57 = vld [vmem:[#allocation3 + $0x6] sm:$0x3] }
 0x37b   : > { %v903_v41 = vld [vmem:[#allocation3 + $0xa] sm:$0x3] }
 0x37c   : > { %2667 = vxpose.binary.xlu1.c.b16.start.end [1/2] (short) (narrow) %v903_v41, %v902_v40, 16  ;;  %v905_v55 = vld [vmem:[#allocation3 + $0xe] sm:$0x3] }
 0x3de   : > { %v1372_v42 = vpop.f32.mrf.mxu2 }
 0x3df   : > { %v1433_v43 = vsel %vm1355_vm11, %v1372_v42, -inf }
 0x3e0   : > { %v1391_v44 = vpop.f32.mrf.mxu3  ;;  %1434 = vmax.xlane.f32.xlu0 %v1433_v43 }
 0x3e1   : > { %v1436_v47 = vsel %vm1355_vm11, %v1391_v44, -inf }
 0x3e6   : > { %v1374_v45 = vpop.f32.mrf.mxu2 }
 0x3e8   : > { %v1393_v46 = vpop.f32.mrf.mxu3 }
 0x3eb   : > { %1437 = vmax.xlane.f32.xlu2 %v1436_v47 }
 0x3ee   : > { %v1410_v48 = vpop.f32.mrf.mxu2 }
 0x3ef   : > { %v1439_v51 = vsel %vm1355_vm11, %v1410_v48, -inf }
 0x3f0   : > { %v1429_v49 = vpop.f32.mrf.mxu3 }
 0x3f1   : > { %v1442_v50 = vsel %vm1355_vm11, %v1429_v49, -inf }
 0x3f2   : > { %1443 = vmax.xlane.f32.xlu1 %v1442_v50 }
 0x3f3   : > { %1440 = vmax.xlane.f32.xlu2 %v1439_v51 }
 0x3f6   : > { %v1412_v52 = vpop.f32.mrf.mxu2 }
 0x3f8   : > { %v1431_v53 = vpop.f32.mrf.mxu3 }
 0x409   : > { %2673 = vxpose.binary.xlu0.c.b16.start.end [1/2] (short) (narrow) %v905_v55, %v904_v54, 16 }
 0x41b   : > { %v2671_v58 = vpop.trf.xlu2 }
 0x41c   : > { %2676 = vxpose.binary.xlu2.c.b16.start.end [1/2] (short) (narrow) %v901_v57, %v900_v56, 16 }
 0x423   : > { %v2672_v5 = vpop.trf.xlu2 }
 0x428   : > { %v2668_v62 = vpop.trf.xlu1 }
 0x429   : > { %v1609_v0 = vrot.slane %v2668_v62, 4 }
 0x42b   : > { %v1610_v1 = vsel %vm578_vm8, %v1609_v0, %v2671_v58 }
 0x42c   : > { %v1614_v27 = vperm.slane %v1610_v1, %v3098_v6 }
 0x42e   : > { %v1623_v30 = vrot.slane %v1614_v27, 4 }
 0x430   : > { %v2669_v2 = vpop.trf.xlu1 }
 0x431   : > { %v1637_v4 = vrot.slane %v2669_v2, 4 }
 0x433   : > { %v1638_v7 = vsel %vm578_vm8, %v1637_v4, %v2672_v5 }
 0x434   : > { %v1642_v36 = vperm.slane %v1638_v7, %v3098_v6 }
 0x453   : > { %v1435_v63 = vpop.xlane.xlu0 %1434 }
 0x454   : > { %v1445_v23 = vsub.f32 %v1372_v42, %v1435_v63  ;;  %v1651_v42 = vrot.slane %v1642_v36, 4 }
 0x456   : > { %v1449_v60 = vmul.f32 1.442695, %v1445_v23 }
 0x45e   : > { %v1438_v8 = vpop.xlane.xlu2 %1437 }
 0x45f   : > { %v1446_v9 = vsub.f32 %v1391_v44, %v1438_v8 }
 0x461   : > { %v1451_v10 = vmul.f32 1.442695, %v1446_v9 }
 0x463   : > { %2705 = vpow2.f32 %v1451_v10 }
 0x465   : > { %v1444_v11 = vpop.xlane.xlu1 %1443 }
 0x466   : > { %v1448_v12 = vsub.f32 %v1429_v49, %v1444_v11  ;;  %v1441_v3 = vpop.xlane.xlu2 %1440 }
 0x467   : > { %v1447_v18 = vsub.f32 %v1410_v48, %v1441_v3 }
 0x468   : > { %v1455_v14 = vmul.f32 1.442695, %v1448_v12 }
 0x469   : > { %v3269_v13 = vpop.eup %2705  ;;  %v1453_v59 = vmul.f32 1.442695, %v1447_v18 }
 0x46a   : > { %2707 = vpow2.f32 %v1455_v14  ;;  %v1460_v17 = vsel %vm1355_vm11, %v3269_v13, 0.0 }
 0x46b   : > { %1461 = vadd.xlane.f32.xlu1 %v1460_v17  ;;  %2709 = vpow2.f32 %v1453_v59 }
 0x46c   : > { %2711 = vpow2.f32 %v1449_v60 }
 0x470   : > { %v3273_v19 = vpop.eup %2707 }
 0x471   : > { %v1466_v20 = vsel %vm1355_vm11, %v3273_v19, 0.0  ;;  %v3277_v21 = vpop.eup %2709 }
 0x472   : > { %v1463_v22 = vsel %vm1355_vm11, %v3277_v21, 0.0  ;;  %v3281_v24 = vpop.eup %2711 }
 0x473   : > { %1467 = vadd.xlane.f32.xlu1 %v1466_v20  ;;  %v1457_v25 = vsel %vm1355_vm11, %v3281_v24, 0.0 }
 0x47a   : > { %1464 = vadd.xlane.f32.xlu0 %v1463_v22 }
 0x48d   : > { %1458 = vadd.xlane.f32.xlu2 %v1457_v25 }
 0x4b5   : > { %v2674_v61 = vpop.trf.xlu0 }
 0x4b6   : > { %v1615_v26 = vrot.slane %v2674_v61, 4 }
 0x4bd   : > { %v2677_v28 = vpop.trf.xlu2  ;;  %v2675_v32 = vpop.trf.xlu0 }
 0x4be   : > { %v1616_v29 = vsel %vm578_vm8, %v1615_v26, %v2677_v28  ;;  %v1643_v35 = vrot.slane %v2675_v32, 4 }
 0x4bf   : > { %v1620_v31 = vperm.slane %v1616_v29, %v3098_v6 }
 0x4c1   : > { %v1621_v33 = vrot.slane %v1620_v31, 4  ;;  %v1624_v34 = vsel %vm578_vm8, %v1620_v31, %v1623_v30 }
 0x4c2   : > { %v1632_v38 = vperm.slane %v1624_v34, %v3107_v16 }
 0x4c3   : > { %v1622_v37 = vsel %vm578_vm8, %v1621_v33, %v1614_v27 }
 0x4c4   : > { %v1628_v39 = vperm.slane %v1622_v37, %v3107_v16  ;;  %v1635_v44 = vrot.slane %v1632_v38, 4  ;;  %v1685_v50 = vshrl.u32 %v1632_v38, 16 }
 0x4c5   : > { %v2678_v40 = vpop.trf.xlu2 }
 0x4c6   : > { %v1644_v41 = vsel %vm578_vm8, %v1643_v35, %v2678_v40  ;;  %v1633_v47 = vrot.slane %v1628_v39, 4  ;;  %v1636_v51 = vsel %vm578_vm8, 0, %v1635_v44  ;;  %v1669_v57 = vshrl.u32 %v1628_v39, 16 }
 0x4c7   : > { %v1648_v43 = vperm.slane %v1644_v41, %v3098_v6  ;;  %v1693_v4 = vshrl.u32 %v1636_v51, 16 }
 0x4c8   : > { %v1634_v56 = vsel %vm578_vm8, 0, %v1633_v47 }
 0x4c9   : > { %v1649_v45 = vrot.slane %v1648_v43, 4  ;;  %v1652_v46 = vsel %vm578_vm8, %v1648_v43, %v1651_v42  ;;  %v1677_v9 = vshrl.u32 %v1634_v56, 16 }
 0x4ca   : > { %v1660_v48 = vperm.slane %v1652_v46, %v3107_v16 }
 0x4cb   : > { %v1650_v49 = vsel %vm578_vm8, %v1649_v45, %v1642_v36 }
 0x4cc   : > { %v1656_v52 = vperm.slane %v1650_v49, %v3107_v16  ;;  %v1683_v53 = vpack.i.b16 %v1660_v48, %v1632_v38  ;;  %v1686_v54 = vshrl.u32 %v1660_v48, 16  ;;  %v1663_v55 = vrot.slane %v1660_v48, 4 }
 0x4ce   : > { %v1687_v58 = vpack.i.b16 %v1686_v54, %v1685_v50  ;;  %v1664_v62 = vsel %vm578_vm8, 0, %v1663_v55  ;;  %v1661_v0 = vrot.slane %v1656_v52, 4  ;;  %v1667_v1 = vpack.i.b16 %v1656_v52, %v1628_v39 }
 0x4cf   : > { %v1691_v2 = vpack.i.b16 %v1664_v62, %v1636_v51  ;;  %v1694_v5 = vshrl.u32 %v1664_v62, 16  ;;  %v1670_v7 = vshrl.u32 %v1656_v52, 16 }
 0x4d0   : > { %2685 = vxpose.binary.xlu2.c.b16.start.end [1/2] (short) (narrow) %v1687_v58, %v1683_v53, 16  ;;  %v1662_v8 = vsel %vm578_vm8, 0, %v1661_v0 }
 0x4d1   : > { %v1695_v10 = vpack.i.b16 %v1694_v5, %v1693_v4  ;;  %v1675_v11 = vpack.i.b16 %v1662_v8, %v1634_v56  ;;  %v1678_v12 = vshrl.u32 %v1662_v8, 16  ;;  %v1671_v3 = vpack.i.b16 %v1670_v7, %v1669_v57 }
 0x4d3   : > { %2679 = vxpose.binary.xlu1.c.b16.start.end [1/2] (short) (narrow) %v1695_v10, %v1691_v2, 16  ;;  %v1679_v14 = vpack.i.b16 %v1678_v12, %v1677_v9 }
 0x4d5   : > { %2682 = vxpose.binary.xlu0.c.b16.start.end [1/2] (short) (narrow) %v1679_v14, %v1675_v11, 16 }
 0x4de   : > { %v1462_v18 = vpop.xlane.xlu1 %1461 }
 0x4df   : > { %2713 = vrcp.f32 %v1462_v18 }
 0x4e5   : > { %v2714_v17 = vpop.eup %2713  ;;  %2688 = vxpose.binary.xlu0.c.b16.start.end [1/2] (short) (narrow) %v1671_v3, %v1667_v1, 16 }
 0x4e6   : > { %v1468_v59 = vpop.xlane.xlu1 %1467  ;;  %v1474_v20 = vmul.f32 %v2714_v17, %v3269_v13 }
 0x4e7   : > { %2715 = vrcp.f32 %v1468_v59 }
 0x4e8   : > { %v1478_v63 = vpack.c.bf16 %v1474_v20, %v1474_v20 }
 0x4ea   : > { %v1900_v22 = vsel %vm1355_vm11, %v1478_v63, 0 }
 0x4eb   : > { %1909 = vmatpush.bf16.xpose.msrb.mxu1 %v1900_v22 }
 0x4ed   : > { %v2716_v23 = vpop.eup %2715  ;;  %v1465_v60 = vpop.xlane.xlu0 %1464 }
 0x4ee   : > { %2717 = vrcp.f32 %v1465_v60  ;;  %v1476_v25 = vmul.f32 %v2716_v23, %v3273_v19 }
 0x4f0   : > { %v1480_v61 = vpack.c.bf16 %v1476_v25, %v1476_v25 }
 0x4f2   : > { %v1938_v26 = vsel %vm1355_vm11, %v1480_v61, 0 }
 0x4f3   : > { %1947 = vmatpush.bf16.xpose.msra.mxu3 %v1938_v26 }
 0x4f4   : > { %v2718_v27 = vpop.eup %2717 }
 0x4f5   : > { %v1475_v28 = vmul.f32 %v2718_v27, %v3277_v21 }
 0x4f7   : > { %v1479_v29 = vpack.c.bf16 %v1475_v28, %v1475_v28 }
 0x4f9   : > { %v1919_v13 = vsel %vm1355_vm11, %v1479_v29, 0 }
 0x4fa   : > { %1928 = vmatpush.bf16.xpose.msra.mxu2 %v1919_v13 }
 0x500   : > { %v1459_v30 = vpop.xlane.xlu2 %1458 }
 0x501   : > { %2719 = vrcp.f32 %v1459_v30 }
 0x507   : > { %v2720_v31 = vpop.eup %2719 }
 0x508   : > { %v1473_v32 = vmul.f32 %v2720_v31, %v3281_v24 }
 0x50a   : > { %v1477_v33 = vpack.c.bf16 %v1473_v32, %v1473_v32 }
 0x50c   : > { %v1881_v34 = vsel %vm1355_vm11, %v1477_v33, 0 }
 0x50d   : > { %1890 = vmatpush.bf16.xpose.msrb.mxu0 %v1881_v34 }
 0x571   : > { %v2686_v38 = vpop.trf.xlu2 }
 0x572   : > { %v1825_v40 = vrot.slane %v2686_v38, 4 }
 0x579   : > { %v2687_v46 = vpop.trf.xlu2 }
 0x57a   : > { %v1845_v49 = vrot.slane %v2687_v46, 4 }
 0x57f   : > { %v2680_v35 = vpop.trf.xlu1 }
 0x580   : > { %v1831_v36 = vrot.slane %v2680_v35, 4 }
 0x581   : > { %v2683_v19 = vpop.trf.xlu0 }
 0x582   : > { %v1832_v21 = vsel %vm578_vm8, %v1831_v36, %v2683_v19 }
 0x583   : > { %v1836_v41 = vperm.slane %v1832_v21, %v3098_v6 }
 0x585   : > { %v1837_v24 = vrot.slane %v1836_v41, 4 }
 0x587   : > { %v2681_v39 = vpop.trf.xlu1 }
 0x588   : > { %v1851_v42 = vrot.slane %v2681_v39, 4 }
 0x589   : > { %v2684_v37 = vpop.trf.xlu0 }
 0x58a   : > { %v1852_v47 = vsel %vm578_vm8, %v1851_v42, %v2684_v37 }
 0x58b   : > { %v1856_v50 = vperm.slane %v1852_v47, %v3098_v6 }
 0x58d   : > { %v1857_v54 = vrot.slane %v1856_v50, 4 }
 0x591   : > { %v2689_v43 = vpop.trf.xlu0 }
 0x592   : > { %v1826_v44 = vsel %vm578_vm8, %v1825_v40, %v2689_v43 }
 0x593   : > { %v1830_v45 = vperm.slane %v1826_v44, %v3098_v6 }
 0x595   : > { %v1838_v48 = vsel %vm578_vm8, %v1837_v24, %v1830_v45 }
 0x596   : > { %v1842_v51 = vperm.slane %v1838_v48, %v3107_v16 }
 0x598   : > { %v1843_v56 = vrot.slane %v1842_v51, 4  ;;  %v1868_v62 = vshrl.u32 %v1842_v51, 16 }
 0x599   : > { %v2690_v52 = vpop.trf.xlu0 }
 0x59a   : > { %v1846_v53 = vsel %vm578_vm8, %v1845_v49, %v2690_v52  ;;  %v1844_v4 = vsel %vm578_vm8, 0, %v1843_v56 }
 0x59b   : > { %v1850_v55 = vperm.slane %v1846_v53, %v3098_v6  ;;  %v1874_v9 = vshrl.u32 %v1844_v4, 16 }
 0x59d   : > { %v1858_v57 = vsel %vm578_vm8, %v1857_v54, %v1850_v55 }
 0x59e   : > { %v1862_v58 = vperm.slane %v1858_v57, %v3107_v16 }
 0x5a0   : > { %v1863_v0 = vrot.slane %v1862_v58, 4  ;;  %v1867_v1 = vpack.i.b16 %v1862_v58, %v1842_v51  ;;  %v1869_v2 = vshrl.u32 %v1862_v58, 16 }
 0x5a2   : > { %2498 = vmatmul.msk.bf16.vlgmr.msrb.gmra.mxu0 %vm1355_vm11, %v1867_v1  ;;  %v1870_v5 = vpack.i.b16 %v1869_v2, %v1868_v62  ;;  %v1864_v7 = vsel %vm578_vm8, 0, %v1863_v0 }
 0x5a3   : > { %v1873_v8 = vpack.i.b16 %v1864_v7, %v1844_v4  ;;  %v1875_v10 = vshrl.u32 %v1864_v7, 16 }
 0x5a4   : > { %2499 = vmatmul.msk.bf16.vlgmr.msrb.gmra.mxu1 %vm1355_vm11, %v1870_v5 }
 0x5a5   : > { %2500 = vmatmul.msk.bf16.vlgmr.msra.gmra.mxu2 %vm1355_vm11, %v1873_v8  ;;  %v1876_v11 = vpack.i.b16 %v1875_v10, %v1874_v9 }
 0x5a7   : > { %2501 = vmatmul.msk.bf16.vlgmr.msra.gmra.mxu3 %vm1355_vm11, %v1876_v11 }
 0x61f   : > { %v1892_v12 = vpop.f32.mrf.mxu0 }
 0x620   : > { %1953 = vxpose.xlu1.b32.start.end [1/1] (short) (narrow) %v1892_v12, 8 }
 0x621   : > { %v1911_v3 = vpop.f32.mrf.mxu1 }
 0x622   : > { %1985 = vxpose.xlu2.b32.start.end [1/1] (short) (narrow) %v1911_v3, 8 }
 0x627   : > { %v1894_v14 = vpop.f32.mrf.mxu0 }
 0x628   : > { %v1930_v18 = vpop.f32.mrf.mxu2 }
 0x629   : > { %v1913_v17 = vpop.f32.mrf.mxu1 }
 0x62a   : > { %v1949_v59 = vpop.f32.mrf.mxu3  ;;  %2017 = vxpose.xlu2.b32.start.end [1/1] (short) (narrow) %v1930_v18, 8 }
 0x62b   : > { %2049 = vxpose.xlu0.b32.start.end [1/1] (short) (narrow) %v1949_v59, 8 }
 0x630   : > { %v1932_v20 = vpop.f32.mrf.mxu2 }
 0x632   : > { %v1951_v63 = vpop.f32.mrf.mxu3 }
 0x6bb   : > { %v2001_v22 = vpop.trf.xlu2 }
 0x6bc   : > { %v2095_v13 = vrot.slane %v2001_v22, 4 }
 0x6c3   : > { %v2033_v23 = vpop.trf.xlu2 }
 0x6c4   : > { %v1969_v60 = vpop.trf.xlu1  ;;  %v2081_v61 = vrot.slane %v2033_v23, 4 }
 0x6c5   : > { %v2083_v25 = vrot.slane %v1969_v60, 4 }
 0x6c6   : > { %v2082_v27 = vsel %vm578_vm8, %v2081_v61, %v1969_v60 }
 0x6c7   : > { %v2084_v26 = vsel %vm578_vm8, %v2033_v23, %v2083_v25  ;;  %v2088_v29 = vperm.slane %v2082_v27, %v3098_v6 }
 0x6c8   : > { %v2092_v28 = vperm.slane %v2084_v26, %v3098_v6 }
 0x6c9   : > { %v2107_v34 = vrot.slane %v2088_v29, 4 }
 0x6ca   : > { %v2119_v30 = vrot.slane %v2092_v28, 4 }
 0x6cf   : > { %v2065_v31 = vpop.trf.xlu0 }
 0x6d0   : > { %v2093_v32 = vrot.slane %v2065_v31, 4  ;;  %v2096_v33 = vsel %vm578_vm8, %v2065_v31, %v2095_v13  ;;  %v2727_v13 = vld [vmem:[%s3048_s21] sm:$0xff] }
 0x6d1   : > { %v2104_v19 = vperm.slane %v2096_v33, %v3098_v6 }
 0x6d2   : > { %v2094_v35 = vsel %vm578_vm8, %v2093_v32, %v2001_v22 }
 0x6d3   : > { %v2100_v36 = vperm.slane %v2094_v35, %v3098_v6  ;;  %v2117_v37 = vrot.slane %v2104_v19, 4  ;;  %v2120_v38 = vsel %vm578_vm8, %v2104_v19, %v2119_v30  ;;  %v2537_v19 = vld [vmem:[#allocation7] sm:$0xff] }
 0x6d4   : > { %v2128_v21 = vperm.slane %v2120_v38, %v3107_v16 }
 0x6d5   : > { %v2105_v39 = vrot.slane %v2100_v36, 4  ;;  %v2108_v40 = vsel %vm578_vm8, %v2100_v36, %v2107_v34  ;;  %v2118_v41 = vsel %vm578_vm8, %v2117_v37, %v2092_v28  ;;  %v2538_v34 = vld [vmem:[#allocation7 + $0x8] sm:$0xff] }
 0x6d6   : > { %v2116_v42 = vperm.slane %v2108_v40, %v3107_v16  ;;  %v2124_v43 = vperm.slane %v2118_v41, %v3107_v16  ;;  %v2135_v44 = vrot.slane %v2128_v21, 4  ;;  %2273 = vmatpush.bf16.msra.mxu0 %v2538_v34 }
 0x6d7   : > { %v2106_v24 = vsel %vm578_vm8, %v2105_v39, %v2088_v29 }
 0x6d8   : > { %v2112_v45 = vperm.slane %v2106_v24, %v3107_v16  ;;  %v2131_v46 = vrot.slane %v2116_v42, 4  ;;  %v2133_v47 = vrot.slane %v2124_v43, 4  ;;  %v2136_v48 = vsel %vm578_vm8, 0.0, %v2135_v44 }
 0x6d9   : > { %v2148_v49 = vsel %vm578_vm8, %v2135_v44, %v2124_v43  ;;  %v2153_v50 = vrot.slane %v2136_v48, 4 }
 0x6da   : > { %v2129_v51 = vrot.slane %v2112_v45, 4  ;;  %v2132_v52 = vsel %vm578_vm8, 0.0, %v2131_v46  ;;  %v2134_v53 = vsel %vm578_vm8, 0.0, %v2133_v47  ;;  %v2152_v54 = vperm.slane %v2148_v49, %v3098_v6  ;;  %2274 = vmatpush.bf16.msra.mxu0 %v2537_v19  ;;  %v2695_v47 = vld [vmem:[%s3452_s7] ss:$0 sm:$0xff] }
 0x6db   : > { %v2142_v55 = vrot.slane %v2132_v52, 4  ;;  %v2137_v56 = vsel %vm578_vm8, %v2131_v46, %v2112_v45  ;;  %v2154_v57 = vsel %vm578_vm8, %v2153_v50, %v2134_v53  ;;  %v2696_v49 = vld [vmem:[%s3453_s8] ss:$0 sm:$0xff]  ;;  %v2542_v53 = vld [vmem:[%s3456_s11 + $0x18] sm:$0xff] }
 0x6dc   : > { %v2130_v58 = vsel %vm578_vm8, 0.0, %v2129_v51  ;;  %v2141_v62 = vperm.slane %v2137_v56, %v3098_v6  ;;  %v2158_v0 = vperm.slane %v2154_v57, %v3098_v6  ;;  %v2173_v1 = vrot.slane %v2152_v54, 4  ;;  %2345 = vmatpush.bf16.msra.mxu1 %v2542_v53  ;;  %v2540_v56 = vld [vmem:[%s3456_s11 + $0x8] sm:$0xff] }
 0x6dd   : > { %v2143_v2 = vsel %vm578_vm8, %v2142_v55, %v2130_v58  ;;  %v2697_v55 = vld [vmem:[%s3455_s10] ss:$0 sm:$0xff] }
 0x6de   : > { %v2147_v4 = vperm.slane %v2143_v2, %v3098_v6  ;;  %v2161_v5 = vrot.slane %v2141_v62, 4  ;;  %v2174_v7 = vsel %vm578_vm8, %v2158_v0, %v2173_v1  ;;  %v2171_v8 = vrot.slane %v2158_v0, 4 }
 0x6df   : > { %v2182_v9 = vperm.slane %v2174_v7, %v3107_v16 }
 0x6e0   : > { %v2162_v10 = vsel %vm578_vm8, %v2147_v4, %v2161_v5  ;;  %v2159_v11 = vrot.slane %v2147_v4, 4  ;;  %v2172_v12 = vsel %vm578_vm8, %v2171_v8, %v2152_v54  ;;  %v2541_v54 = vld [vmem:[%s3456_s11 + $0x10] sm:$0xff] }
 0x6e1   : > { %v2170_v3 = vperm.slane %v2162_v10, %v3107_v16  ;;  %v2187_v14 = vrot.slane %v2182_v9, 4  ;;  %v2178_v18 = vperm.slane %v2172_v12, %v3107_v16  ;;  %2346 = vmatpush.bf16.msra.mxu1 %v2541_v54 }
 0x6e2   : > { %v2160_v17 = vsel %vm578_vm8, %v2159_v11, %v2141_v62  ;;  %v2539_v62 = vld [vmem:[%s3456_s11] sm:$0xff] }
 0x6e3   : > { %v2188_v6 = vsel %vm578_vm8, %v2187_v14, %v2170_v3  ;;  %v2189_v59 = vrot.slane %v2170_v3, 4  ;;  %v2166_v20 = vperm.slane %v2160_v17, %v3107_v16  ;;  %v2183_v63 = vrot.slane %v2178_v18, 4 }
 0x6e4   : > { %2196 = vrot.lane.b32.xlu2 %v2188_v6, %s2887_s29  ;;  %s2368_s29 = scalar_lea.hbm %s3458_s13, %s2530_s19 }
 0x6e5   : > { %v2190_v22 = vsel %vm578_vm8, %v2182_v9, %v2189_v59  ;;  %v2185_v23 = vrot.slane %v2166_v20, 4  ;;  %v2184_v60 = vsel %vm578_vm8, %v2183_v63, %v2166_v20  ;;  %2347 = vmatpush.bf16.msra.mxu1 %v2540_v56  ;;  %v2698_v59 = vld [vmem:[%s3457_s12] ss:$0 sm:$0xff]  ;;  %s2372_s21 = sshll.u32 %s2368_s29, 4  ;;  %s2373_s21 = int_to_ptr.hbm [resolvable:$true] %s2372_s21 }
 0x6e6   : > { %2200 = vrot.lane.b32.xlu0 %v2190_v22, %s2888_s27  ;;  %s477_s27 = scalar_lea.vmem [#allocation9], %s2474_s23  ;;  %s2802_s20 = sshra.s32 %s2373_s21, 4  ;;  %s2803_s20 = int_to_ptr.hbm [resolvable:$true] %s2802_s20 }
 0x6e7   : > { %v2186_v25 = vsel %vm578_vm8, %v2178_v18, %v2185_v23  ;;  %s2804_s17 = scalar_lea.hbm %s2803_s20, 8  ;;  %s2808_s23 = scalar_lea.hbm %s3458_s13, 16 }
 0x6e8   : > { %2192 = vrot.lane.b32.xlu1 %v2186_v25, %s2889_s16  ;;  %s2370_s16 = sshll.u32 %s477_s27, 4  ;;  %p2805_p1 = scmp.ne.s32.totalorder %s2803_s20, %s2804_s17  ;;  %s2371_s16 = int_to_ptr.vmem [resolvable:$true] %s2370_s16 }
 0x6e9   : > { %2348 = vmatpush.bf16.msra.mxu1 %v2539_v62  ;;  %p2809_p5 = scmp.lt.s32.totalorder %s2803_s20, %s3458_s13  ;;  %p2810_p6 = scmp.lt.s32.totalorder %s2808_s23, %s2804_s17 }
 0x6ea   : > { %p2806_p2 = pnand %p2805_p1, %p3000_p4 }
 0x6eb   : > { %p2811_p7 = por %p2810_p6, %p2809_p5 }
 0x6ec   : > { %p2807_p3 = pneg %p2806_p2 }
 0x6ee   : > { %p2812_p9 = pnand %p2811_p7, %p2807_p3 }
 0x73e   : > { %v2197_v26 = vpop.permute.xlu2 %2196 }
 0x758   : > { %v2201_v27 = vpop.permute.xlu0 %2200 }
 0x75a   : > { %v2193_v61 = vpop.permute.xlu1 %2192 }
 0x75b   : > { %v2203_v16 = vsel %vm1355_vm11, %v2184_v60, %v2193_v61 }
 0x75c   : > { %v2205_v28 = vsel %vm2204_vm12, %v2203_v16, %v2197_v26 }
 0x75d   : > { %v2207_v29 = vsel %vm2206_vm13, %v2205_v28, %v2201_v27 }
 0x75e   : > { %v3371_v30 = vadd.f32 %v2727_v13, %v2207_v29 }
 0x760   : > { %v2211_v31 = vsel %vm490_vm0, %v3371_v30, 0.0  ;;  %v2214_v32 = vmul.f32 %v3371_v30, %v3371_v30 }
 0x761   : > { %2212 = vadd.xlane.f32.xlu1 %v2211_v31 }
 0x762   : > { %v2215_v33 = vsel %vm490_vm0, %v2214_v32, 0.0 }
 0x763   : > { %2216 = vadd.xlane.f32.xlu2 %v2215_v33 }
 0x7d4   : > { %v2213_v35 = vpop.xlane.xlu1 %2212 }
 0x7d5   : > { %v2218_v36 = vmul.f32 %v2213_v35, %v3067_v15 }
 0x7d6   : > { %v2217_v37 = vpop.xlane.xlu2 %2216 }
 0x7d7   : > { %v2220_v38 = vmul.f32 %v2218_v36, %v2218_v36  ;;  %v2219_v21 = vmul.f32 %v2217_v37, %v3067_v15  ;;  %v2222_v46 = vsub.f32 %v3371_v30, %v2218_v36 }
 0x7d9   : > { %v2221_v39 = vsub.f32 %v2219_v21, %v2220_v38 }
 0x7db   : > { %v2223_v40 = vadd.f32 1e-05, %v2221_v39 }
 0x7dd   : > { %2721 = vrsqrt.f32 %v2223_v40  ;;  %vm2230_vm15 = vweird.f32 %v2223_v40 }
 0x7e3   : > { %v2722_v41 = vpop.eup %2721 }
 0x7e4   : > { %v2225_v42 = vmul.f32 %v2722_v41, %v2223_v40  ;;  %vm2231_vm14 = vweird.f32 %v2722_v41 }
 0x7e5   : > { %vm2232_vm1 = vmor %vm2230_vm15, %vm2231_vm14 }
 0x7e6   : > { %v2226_v43 = vmul.f32 %v2722_v41, %v2225_v42 }
 0x7e8   : > { %v2227_v44 = vmul.f32 0.5, %v2226_v43 }
 0x7ea   : > { %v2228_v24 = vsub.f32 1.5, %v2227_v44 }
 0x7ec   : > { %v2229_v45 = vmul.f32 %v2722_v41, %v2228_v24 }
 0x7ee   : > { %v2233_v15 = vsel %vm2232_vm1, %v2722_v41, %v2229_v45 }
 0x7ef   : > { %v2234_v48 = vmul.f32 %v2233_v15, %v2222_v46 }
 0x7f1   : > { %v2238_v50 = vmul.f32 %v2695_v47, %v2234_v48 }
 0x7f3   : > { %v2242_v51 = vadd.f32 %v2696_v49, %v2238_v50 }
 0x7f5   : > { %v2243_v52 = vpack.c.bf16 %v2242_v51, %v2242_v51 }
 0x7f7   : > { %2510 = vmatmul.msk.bf16.vlgmr.msra.gmra.mxu0 %vm490_vm0, %v2243_v52 }
 0x874   : > { %v2276_v57 = vpop.f32.mrf.mxu0 }
 0x875   : > { %v2277_v58 = vadd.f32 %v2697_v55, %v2276_v57 }
 0x877   : > { %v2511_v0 = vmul.f32 -1.442695, %v2277_v58 }
 0x879   : > { %2723 = vpow2.f32 %v2511_v0 }
 0x87c   : > { %v2278_v1 = vpop.f32.mrf.mxu0 }
 0x87f   : > { %v2724_v2 = vpop.eup %2723 }
 0x880   : > { %v2283_v4 = vadd.f32 1.0, %v2724_v2 }
 0x882   : > { %2725 = vrcp.f32 %v2283_v4  ;;  %v2295_v9 = vand.u32 2147483648, %v2283_v4  ;;  %v2293_v11 = vand.u32 2147483647, %v2283_v4  ;;  %vm2289_vm3 = vweird.f32 %v2283_v4 }
 0x884   : > { %v2296_v3 = vor.u32 1.1754944e-38, %v2295_v9  ;;  %vm2294_vm5 = vcmp.eq.f32.partialorder %v2293_v11, 8.507059e+37 }
 0x888   : > { %v2726_v5 = vpop.eup %2725 }
 0x889   : > { %v2285_v7 = vmul.f32 %v2726_v5, %v2283_v4  ;;  %vm2290_vm2 = vweird.f32 %v2726_v5 }
 0x88a   : > { %vm2291_vm4 = vmor %vm2289_vm3, %vm2290_vm2 }
 0x88b   : > { %v2286_v8 = vsub.f32 1.0, %v2285_v7 }
 0x88d   : > { %v2287_v10 = vmul.f32 %v2726_v5, %v2286_v8 }
 0x88f   : > { %v2288_v12 = vadd.f32 %v2726_v5, %v2287_v10 }
 0x891   : > { %v2292_v14 = vsel %vm2291_vm4, %v2726_v5, %v2288_v12 }
 0x892   : > { %v2297_v18 = vsel %vm2294_vm5, %v2296_v3, %v2292_v14 }
 0x893   : > { %v2299_v17 = vmul.f32 %v2297_v18, %v2277_v58 }
 0x895   : > { %v2300_v6 = vpack.c.bf16 %v2299_v17, %v2299_v17 }
 0x897   : > { %2528 = vmatmul.msk.bf16.vlgmr.msra.gmra.mxu1 %vm2337_vm6, %v2300_v6 }
 0x914   : > { %v2350_v20 = vpop.f32.mrf.mxu1 }
 0x915   : > { %v2351_v63 = vadd.f32 %v2698_v59, %v2350_v20 }
 0x917   : > { %v2354_v22 = vadd.f32 %v2351_v63, %v3371_v30 }
 0x919   : > { %2355 = vst.msk [vmem:[%s477_s27] sm:$0xff] %vm490_vm0, %v2354_v22 }
 0x91a   : > { %2815 = shalt.err (!%p2812_p9)
}
 0x91b   : > { %2551 = dma.vmem_to_hbm [thread:$0]  (%p3000_p4), %s2371_s16, 128, %s2373_s21, %s2357_s28  }
 0x91c   : > { %v2352_v23 = vpop.f32.mrf.mxu1 }
 0x91d PF: > { %p2568_p10 = scmp.ge.s32.totalorder %s2874_s30, 2  ;;  %s2384_s29 = sand.u32 1, %s2854_s25  }
 0x91e   : > { %s2385_s27 = scalar_lea.sflag [#allocation6], %s2384_s29 }
 0x91f   : > { %p2561_p11 = pnand %p2568_p10, %p3007_p8 }
 0x921   : > { %p2562_p12 = pneg %p2561_p11 }
 0x923   : > { %2849 = dma.done.wait (%p2562_p12), %s2385_s27, 128  }
 0x924   : > { %2851 = vsyncadd (%p2562_p12), %s2385_s27, 4294967168  ;;  %s28_s30 = sadd.s32 1, %s2874_s30   ;;  %s3473_s20 = sld [smem:[#allocation13_spill]] }
 0x925   : > { %p25_p13 = scmp.ge.s32.totalorder %s28_s30, 4   ;;  %s3474_s27 = sld [smem:[#allocation17_spill]] }
 0x926   : > { %s3475_s28 = sld [smem:[#allocation14_spill]]  ;;  %s3477_s25 = smov %s2858_s26 }
 0x927   : > { %s3476_s29 = sld [smem:[#allocation15_spill]]  ;;  %27 = sbr.rel (!%p25_p13) target bundleno = 6 (0x6), region = 121 }
 0x92a   : > { %s3478_s26 = smov %s3473_s20 }
 0x92c   :  { %2391 = vsyncpa [#allocation5], 1 }
 0x92d   :  { %2393 = vsyncpa [#allocation5 + $0x1], 1 }
 0x92e   :  { %2394 = vsyncpa [#allocation8], 1 }
 0x92f   :  { %2395 = vsyncpa [#allocation6], 1 }
 0x930   :  { %2397 = vsyncpa [#allocation6 + $0x1], 1 }

</bundles_post_ra>
